<compile_context>
chip_gen: v6e
topology: v6e:2x2x1
jax: 0.10.0
libtpu: 0.0.40
codegen_flags: <defaults>
</compile_context>

<pallas_src>
import jax
import jax.numpy as jnp
from jax import lax
from jax.experimental import pallas as pl
from jax.experimental.pallas import tpu as pltpu

IN_DIM = 512        # fixed by the module (prev_dim = 512)
OUT_DIM = 128       # out_dim
BN_EPS = 1e-5


def _bn_relu_fused(h, inv_n, gamma=None, beta=None, relu=True):
    """One-pass BatchNorm (batch stats, biased var) fused with affine + ReLU.

    Sufficient statistics: sum(h), sum(h*h) -> mu, var = E[h^2] - mu^2.
    Normalize + affine folded into a single per-feature scale/shift.
    """
    s = jnp.sum(h, axis=0, keepdims=True)
    ss = jnp.sum(h * h, axis=0, keepdims=True)
    mu = s * inv_n
    var = ss * inv_n - mu * mu
    scale = lax.rsqrt(var + BN_EPS)                 # EUP
    if gamma is not None:
        scale = scale * gamma
    if beta is not None:
        shift = beta - mu * scale
    else:
        shift = -mu * scale
    out = h * scale + shift
    if relu:
        out = jnp.maximum(out, 0.0)
    return out


def head_simsiam_kernel(x_ref, w1_ref, w2_ref, w3_ref, gb_ref, o_ref):
    n = x_ref.shape[0]
    inv_n = jnp.float32(1.0 / n)

    # Packed BN affine params: rows = [gamma1, beta1, gamma2, beta2].
    g1 = gb_ref[0:1, :]
    b1 = gb_ref[1:2, :]
    g2 = gb_ref[2:3, :]
    b2 = gb_ref[3:4, :]

    # Layer 1: Linear(512,512,bias=False) -> BN -> ReLU
    h = jnp.dot(x_ref[...].astype(jnp.bfloat16), w1_ref[...],
                preferred_element_type=jnp.float32)
    h = _bn_relu_fused(h, inv_n, g1, b1)

    # Layer 2: Linear(512,512,bias=False) -> BN -> ReLU
    h = jnp.dot(h.astype(jnp.bfloat16), w2_ref[...],
                preferred_element_type=jnp.float32)
    h = _bn_relu_fused(h, inv_n, g2, b2)

    # Layer 3: Linear(512,out_dim) -> BN(affine=False).
    # The Linear bias is a per-feature constant, cancelled exactly by the
    # affine-free BatchNorm's mean subtraction, so it is omitted entirely.
    h = jnp.dot(h.astype(jnp.bfloat16), w3_ref[...],
                preferred_element_type=jnp.float32)
    o_ref[...] = _bn_relu_fused(h, inv_n, relu=False).astype(o_ref.dtype)


def head_simsiam(x, params):
    (w1, g1, b1, w2, g2, b2, w3, _bias3) = params   # bias3 unused (cancelled)
    n = x.shape[0]

    # bf16 weights: native MXU path + half the weight HBM traffic.
    w1b = w1.astype(jnp.bfloat16)
    w2b = w2.astype(jnp.bfloat16)
    w3b = w3.astype(jnp.bfloat16)
    # Pack the four (1,512) BN affine vectors into a single (4,512) input.
    gb = jnp.concatenate([g1, b1, g2, b2], axis=0)

    full = lambda shape: pl.BlockSpec(shape, lambda i: (0,) * len(shape))
    return pl.pallas_call(
        head_simsiam_kernel,
        out_shape=jax.ShapeDtypeStruct((n, OUT_DIM), jnp.float32),
        grid=(1,),
        in_specs=[
            full(x.shape),
            full(w1b.shape), full(w2b.shape), full(w3b.shape),
            full(gb.shape),
        ],
        out_specs=full((n, OUT_DIM)),
        compiler_params=pltpu.CompilerParams(
            dimension_semantics=("arbitrary",)),
    )(x, w1b, w2b, w3b, gb)


def init_params(key):
    """Deterministic init mirroring PyTorch defaults (kaiming-uniform-ish)."""
    k1, k2, k3, k4 = jax.random.split(key, 4)
    bound = 1.0 / jnp.sqrt(IN_DIM)
    # Linear weights stored as (in, out) == PyTorch weight.T
    w1 = jax.random.uniform(k1, (IN_DIM, IN_DIM), jnp.float32, -bound, bound)
    w2 = jax.random.uniform(k2, (IN_DIM, IN_DIM), jnp.float32, -bound, bound)
    w3 = jax.random.uniform(k3, (IN_DIM, OUT_DIM), jnp.float32, -bound, bound)
    bias3 = jax.random.uniform(k4, (1, OUT_DIM), jnp.float32, -bound, bound)
    # BatchNorm affine params: gamma=1, beta=0 (PyTorch default)
    g1 = jnp.ones((1, IN_DIM), jnp.float32)
    b1 = jnp.zeros((1, IN_DIM), jnp.float32)
    g2 = jnp.ones((1, IN_DIM), jnp.float32)
    b2 = jnp.zeros((1, IN_DIM), jnp.float32)
    return (w1, g1, b1, w2, g2, b2, w3, bias3)


def reference(x, params):
    """Pure-JAX reference of the same forward pass (same bf16-operand matmul
    precision, classic two-pass BN, and the final-layer bias kept in place to
    demonstrate that the affine-free BN cancels it)."""
    (w1, g1, b1, w2, g2, b2, w3, bias3) = params

    def bn(h, g=None, b=None):
        mu = jnp.mean(h, axis=0, keepdims=True)
        var = jnp.mean((h - mu) * (h - mu), axis=0, keepdims=True)
        hn = (h - mu) * lax.rsqrt(var + BN_EPS)
        if g is not None:
            hn = hn * g + b
        return hn

    dot = lambda a, w: jnp.dot(a.astype(jnp.bfloat16), w.astype(jnp.bfloat16),
                               preferred_element_type=jnp.float32)

    h = jnp.maximum(bn(dot(x, w1), g1, b1), 0.0)
    h = jnp.maximum(bn(dot(h, w2), g2, b2), 0.0)
    h = dot(h, w3) + bias3          # bias kept; cancelled by affine-free BN
    return bn(h)


if __name__ == "__main__":
    key = jax.random.PRNGKey(0)
    kx, kp = jax.random.split(key)
    N = 8
    x = jax.random.normal(kx, (N, IN_DIM), jnp.float32)
    params = init_params(kp)

    out = head_simsiam(x, params)
    out = jax.block_until_ready(out)

    ref = reference(x, params)
    assert out.shape == (N, OUT_DIM)
    assert jnp.allclose(out, ref, atol=1e-3, rtol=1e-3), float(
        jnp.max(jnp.abs(out - ref)))
    print("KERNEL_OK")
</pallas_src>

<mosaic_0001>
module attributes {stable_mosaic.version = 11 : i64} {
  func.func @head_simsiam_kernel(%arg0: i32, %arg1: memref<8x512xf32, #tpu.memory_space<vmem>>, %arg2: memref<512x512xbf16, #tpu.memory_space<vmem>>, %arg3: memref<512x512xbf16, #tpu.memory_space<vmem>>, %arg4: memref<512x128xbf16, #tpu.memory_space<vmem>>, %arg5: memref<4x512xf32, #tpu.memory_space<vmem>>, %arg6: memref<8x128xf32, #tpu.memory_space<vmem>>) attributes {dimension_semantics = [#tpu.dimension_semantics<arbitrary>], iteration_bounds = array<i64: 1>, scalar_prefetch = 0 : i64, scratch_operands = 0 : i64, tpu.core_type = #tpu.core_type<tc>, window_params = [{pipeline_mode = #tpu.pipeline_mode<synchronous>, transform_indices = @transform_0, window_bounds = array<i64: 8, 512>}, {pipeline_mode = #tpu.pipeline_mode<synchronous>, transform_indices = @transform_1, window_bounds = array<i64: 512, 512>}, {pipeline_mode = #tpu.pipeline_mode<synchronous>, transform_indices = @transform_2, window_bounds = array<i64: 512, 512>}, {pipeline_mode = #tpu.pipeline_mode<synchronous>, transform_indices = @transform_3, window_bounds = array<i64: 512, 128>}, {pipeline_mode = #tpu.pipeline_mode<synchronous>, transform_indices = @transform_4, window_bounds = array<i64: 4, 512>}, {pipeline_mode = #tpu.pipeline_mode<synchronous>, transform_indices = @transform_5, window_bounds = array<i64: 8, 128>}]} {
    %c0 = arith.constant 0 : index
    %c0_0 = arith.constant 0 : index
    %0 = vector.load %arg5[%c0, %c0_0] : memref<4x512xf32, #tpu.memory_space<vmem>>, vector<1x512xf32>
    %c1 = arith.constant 1 : index
    %c0_1 = arith.constant 0 : index
    %1 = vector.load %arg5[%c1, %c0_1] : memref<4x512xf32, #tpu.memory_space<vmem>>, vector<1x512xf32>
    %c2 = arith.constant 2 : index
    %c0_2 = arith.constant 0 : index
    %2 = vector.load %arg5[%c2, %c0_2] : memref<4x512xf32, #tpu.memory_space<vmem>>, vector<1x512xf32>
    %c3 = arith.constant 3 : index
    %c0_3 = arith.constant 0 : index
    %3 = vector.load %arg5[%c3, %c0_3] : memref<4x512xf32, #tpu.memory_space<vmem>>, vector<1x512xf32>
    %c0_4 = arith.constant 0 : index
    %c0_5 = arith.constant 0 : index
    %4 = vector.load %arg1[%c0_4, %c0_5] : memref<8x512xf32, #tpu.memory_space<vmem>>, vector<8x512xf32>
    %5 = arith.truncf %4 : vector<8x512xf32> to vector<8x512xbf16>
    %c0_6 = arith.constant 0 : index
    %c0_7 = arith.constant 0 : index
    %6 = vector.load %arg2[%c0_6, %c0_7] : memref<512x512xbf16, #tpu.memory_space<vmem>>, vector<512x512xbf16>
    %cst = arith.constant dense<0.000000e+00> : vector<8x512xf32>
    %7 = tpu.matmul %5, %6, %cst {dimension_numbers = #tpu.dot_dimension_numbers<[1], [0], [0], [1], [0, 0, 1, 1], [], []>} : vector<8x512xbf16>, vector<512x512xbf16>, vector<8x512xf32> -> vector<8x512xf32>
    %cst_8 = arith.constant dense<0.000000e+00> : vector<512xf32>
    %8 = vector.multi_reduction <add>, %7, %cst_8 [0] : vector<8x512xf32> to vector<512xf32>
    %9 = vector.shape_cast %8 : vector<512xf32> to vector<1x512xf32>
    %10 = arith.mulf %7, %7 : vector<8x512xf32>
    %cst_9 = arith.constant dense<0.000000e+00> : vector<512xf32>
    %11 = vector.multi_reduction <add>, %10, %cst_9 [0] : vector<8x512xf32> to vector<512xf32>
    %12 = vector.shape_cast %11 : vector<512xf32> to vector<1x512xf32>
    %cst_10 = arith.constant 1.250000e-01 : f32
    %13 = vector.broadcast %cst_10 : f32 to vector<1x512xf32>
    %14 = arith.mulf %9, %13 : vector<1x512xf32>
    %cst_11 = arith.constant 1.250000e-01 : f32
    %15 = vector.broadcast %cst_11 : f32 to vector<1x512xf32>
    %16 = arith.mulf %12, %15 : vector<1x512xf32>
    %17 = arith.mulf %14, %14 : vector<1x512xf32>
    %18 = arith.subf %16, %17 : vector<1x512xf32>
    %cst_12 = arith.constant 9.99999974E-6 : f32
    %19 = vector.broadcast %cst_12 : f32 to vector<1x512xf32>
    %20 = arith.addf %18, %19 : vector<1x512xf32>
    %21 = math.rsqrt %20 : vector<1x512xf32>
    %22 = arith.mulf %21, %0 : vector<1x512xf32>
    %23 = arith.mulf %14, %22 : vector<1x512xf32>
    %24 = arith.subf %1, %23 : vector<1x512xf32>
    %25 = vector.broadcast %22 : vector<1x512xf32> to vector<8x512xf32>
    %26 = arith.mulf %7, %25 : vector<8x512xf32>
    %27 = vector.broadcast %24 : vector<1x512xf32> to vector<8x512xf32>
    %28 = arith.addf %26, %27 : vector<8x512xf32>
    %cst_13 = arith.constant 0.000000e+00 : f32
    %29 = vector.broadcast %cst_13 : f32 to vector<8x512xf32>
    %30 = arith.maximumf %28, %29 : vector<8x512xf32>
    %31 = arith.truncf %30 : vector<8x512xf32> to vector<8x512xbf16>
    %c0_14 = arith.constant 0 : index
    %c0_15 = arith.constant 0 : index
    %32 = vector.load %arg3[%c0_14, %c0_15] : memref<512x512xbf16, #tpu.memory_space<vmem>>, vector<512x512xbf16>
    %cst_16 = arith.constant dense<0.000000e+00> : vector<8x512xf32>
    %33 = tpu.matmul %31, %32, %cst_16 {dimension_numbers = #tpu.dot_dimension_numbers<[1], [0], [0], [1], [0, 0, 1, 1], [], []>} : vector<8x512xbf16>, vector<512x512xbf16>, vector<8x512xf32> -> vector<8x512xf32>
    %cst_17 = arith.constant dense<0.000000e+00> : vector<512xf32>
    %34 = vector.multi_reduction <add>, %33, %cst_17 [0] : vector<8x512xf32> to vector<512xf32>
    %35 = vector.shape_cast %34 : vector<512xf32> to vector<1x512xf32>
    %36 = arith.mulf %33, %33 : vector<8x512xf32>
    %cst_18 = arith.constant dense<0.000000e+00> : vector<512xf32>
    %37 = vector.multi_reduction <add>, %36, %cst_18 [0] : vector<8x512xf32> to vector<512xf32>
    %38 = vector.shape_cast %37 : vector<512xf32> to vector<1x512xf32>
    %cst_19 = arith.constant 1.250000e-01 : f32
    %39 = vector.broadcast %cst_19 : f32 to vector<1x512xf32>
    %40 = arith.mulf %35, %39 : vector<1x512xf32>
    %cst_20 = arith.constant 1.250000e-01 : f32
    %41 = vector.broadcast %cst_20 : f32 to vector<1x512xf32>
    %42 = arith.mulf %38, %41 : vector<1x512xf32>
    %43 = arith.mulf %40, %40 : vector<1x512xf32>
    %44 = arith.subf %42, %43 : vector<1x512xf32>
    %cst_21 = arith.constant 9.99999974E-6 : f32
    %45 = vector.broadcast %cst_21 : f32 to vector<1x512xf32>
    %46 = arith.addf %44, %45 : vector<1x512xf32>
    %47 = math.rsqrt %46 : vector<1x512xf32>
    %48 = arith.mulf %47, %2 : vector<1x512xf32>
    %49 = arith.mulf %40, %48 : vector<1x512xf32>
    %50 = arith.subf %3, %49 : vector<1x512xf32>
    %51 = vector.broadcast %48 : vector<1x512xf32> to vector<8x512xf32>
    %52 = arith.mulf %33, %51 : vector<8x512xf32>
    %53 = vector.broadcast %50 : vector<1x512xf32> to vector<8x512xf32>
    %54 = arith.addf %52, %53 : vector<8x512xf32>
    %cst_22 = arith.constant 0.000000e+00 : f32
    %55 = vector.broadcast %cst_22 : f32 to vector<8x512xf32>
    %56 = arith.maximumf %54, %55 : vector<8x512xf32>
    %57 = arith.truncf %56 : vector<8x512xf32> to vector<8x512xbf16>
    %c0_23 = arith.constant 0 : index
    %c0_24 = arith.constant 0 : index
    %58 = vector.load %arg4[%c0_23, %c0_24] : memref<512x128xbf16, #tpu.memory_space<vmem>>, vector<512x128xbf16>
    %cst_25 = arith.constant dense<0.000000e+00> : vector<8x128xf32>
    %59 = tpu.matmul %57, %58, %cst_25 {dimension_numbers = #tpu.dot_dimension_numbers<[1], [0], [0], [1], [0, 0, 1, 1], [], []>} : vector<8x512xbf16>, vector<512x128xbf16>, vector<8x128xf32> -> vector<8x128xf32>
    %cst_26 = arith.constant dense<0.000000e+00> : vector<128xf32>
    %60 = vector.multi_reduction <add>, %59, %cst_26 [0] : vector<8x128xf32> to vector<128xf32>
    %61 = vector.shape_cast %60 : vector<128xf32> to vector<1x128xf32>
    %62 = arith.mulf %59, %59 : vector<8x128xf32>
    %cst_27 = arith.constant dense<0.000000e+00> : vector<128xf32>
    %63 = vector.multi_reduction <add>, %62, %cst_27 [0] : vector<8x128xf32> to vector<128xf32>
    %64 = vector.shape_cast %63 : vector<128xf32> to vector<1x128xf32>
    %cst_28 = arith.constant 1.250000e-01 : f32
    %65 = vector.broadcast %cst_28 : f32 to vector<1x128xf32>
    %66 = arith.mulf %61, %65 : vector<1x128xf32>
    %cst_29 = arith.constant 1.250000e-01 : f32
    %67 = vector.broadcast %cst_29 : f32 to vector<1x128xf32>
    %68 = arith.mulf %64, %67 : vector<1x128xf32>
    %69 = arith.mulf %66, %66 : vector<1x128xf32>
    %70 = arith.subf %68, %69 : vector<1x128xf32>
    %cst_30 = arith.constant 9.99999974E-6 : f32
    %71 = vector.broadcast %cst_30 : f32 to vector<1x128xf32>
    %72 = arith.addf %70, %71 : vector<1x128xf32>
    %73 = math.rsqrt %72 : vector<1x128xf32>
    %cst_31 = arith.constant 0.000000e+00 : f32
    %74 = vector.broadcast %cst_31 : f32 to vector<1x128xf32>
    %75 = arith.subf %74, %66 : vector<1x128xf32>
    %76 = arith.mulf %75, %73 : vector<1x128xf32>
    %77 = vector.broadcast %73 : vector<1x128xf32> to vector<8x128xf32>
    %78 = arith.mulf %59, %77 : vector<8x128xf32>
    %79 = vector.broadcast %76 : vector<1x128xf32> to vector<8x128xf32>
    %80 = arith.addf %78, %79 : vector<8x128xf32>
    %c0_32 = arith.constant 0 : index
    %c0_33 = arith.constant 0 : index
    %81 = vector.load %arg6[%c0_32, %c0_33] : memref<8x128xf32, #tpu.memory_space<vmem>>, vector<8x128xf32>
    tpu.vector_store %arg6[%c0_32, %c0_33], %80 {strides = array<i32>} : memref<8x128xf32, #tpu.memory_space<vmem>>, vector<8x128xf32>,
    return
  }
  func.func @transform_0(%arg0: i32) -> (i32, i32) {
    %c0_i32 = arith.constant 0 : i32
    %c0_i32_0 = arith.constant 0 : i32
    %c0_i32_1 = arith.constant 0 : i32
    return %c0_i32, %c0_i32_0 : i32, i32
  }
  func.func @transform_1(%arg0: i32) -> (i32, i32) {
    %c0_i32 = arith.constant 0 : i32
    %c0_i32_0 = arith.constant 0 : i32
    %c0_i32_1 = arith.constant 0 : i32
    return %c0_i32, %c0_i32_0 : i32, i32
  }
  func.func @transform_2(%arg0: i32) -> (i32, i32) {
    %c0_i32 = arith.constant 0 : i32
    %c0_i32_0 = arith.constant 0 : i32
    %c0_i32_1 = arith.constant 0 : i32
    return %c0_i32, %c0_i32_0 : i32, i32
  }
  func.func @transform_3(%arg0: i32) -> (i32, i32) {
    %c0_i32 = arith.constant 0 : i32
    %c0_i32_0 = arith.constant 0 : i32
    %c0_i32_1 = arith.constant 0 : i32
    return %c0_i32, %c0_i32_0 : i32, i32
  }
  func.func @transform_4(%arg0: i32) -> (i32, i32) {
    %c0_i32 = arith.constant 0 : i32
    %c0_i32_0 = arith.constant 0 : i32
    %c0_i32_1 = arith.constant 0 : i32
    return %c0_i32, %c0_i32_0 : i32, i32
  }
  func.func @transform_5(%arg0: i32) -> (i32, i32) {
    %c0_i32 = arith.constant 0 : i32
    %c0_i32_0 = arith.constant 0 : i32
    %c0_i32_1 = arith.constant 0 : i32
    return %c0_i32, %c0_i32_0 : i32, i32
  }
}

</mosaic_0001>

<bundles_post_ra>
// kernel: tpu_custom_call.1
= control target key start
LH: loop header
LB: loop body
LE: loop exit
PB: predicated region body
PF: predicated region fallthrough
CT: control target
= control target key end

     0   :  { %10 = vsyncpa [#allocation3], 0  ;;  %s3848_s0 = inlined_call_operand.hbm [shape: f32[8,512], index: 0, kind: input, shape index: {}]   ;;  %s3849_s1 = inlined_call_operand.hbm [shape: bf16[512,512], index: 1, kind: input, shape index: {}]   ;;  %s3850_s2 = inlined_call_operand.hbm [shape: bf16[512,512], index: 2, kind: input, shape index: {}]   ;;  %s3851_s3 = inlined_call_operand.hbm [shape: bf16[512,128], index: 3, kind: input, shape index: {}]   ;;  %s3852_s4 = inlined_call_operand.hbm [shape: f32[4,512], index: 4, kind: input, shape index: {}]   ;;  %s3853_s5 = inlined_call_operand.hbm [shape: f32[8,128], index: 5, kind: output, shape index: {}]  }
   0x1   :  { %11 = vsyncpa [#allocation6], 0 }
   0x2   :  { %12 = vsyncpa [#allocation9], 0 }
   0x3   :  { %13 = vsyncpa [#allocation4], 0  ;;  %s3623_s18 = smov [#allocation5]  }
   0x4   :  { %s29_s19 = sshll.u32 %s3623_s18, 4  ;;  %s30_s19 = int_to_ptr.vmem [resolvable:$true] %s29_s19 }
   0x5   :  { %s3503_s20 = scalar_lea.vmem %s30_s19, 16384  ;;  %p3508_p1 = scmp.lt.s32.totalorder %s30_s19, %s30_s19 }
   0x6   :  { %p3504_p0 = scmp.ne.s32.totalorder %s30_s19, %s3503_s20  ;;  %p3509_p2 = scmp.lt.s32.totalorder %s3503_s20, %s3503_s20 }
   0x8   :  { %p3510_p3 = por %p3509_p2, %p3508_p1 }
   0xa   :  { %p3511_p4 = pnand %p3510_p3, %p3504_p0 }
   0xc   :  { %3514 = shalt.err (!%p3511_p4)
}
   0xd   :  { %s3624_s21 = smov 256   ;;  %s3625_s22 = smov 16  }
   0xe   :  { %35 = dma.hbm_to_vmem [thread:$0]  %s3849_s1, 16384, %s30_s19, [#allocation6], %s3624_s21, %s3624_s21, %s3625_s22  }
   0xf   :  { %s3626_s25 = smov [#allocation8]  }
  0x10   :  { %s53_s26 = sshll.u32 %s3626_s25, 4  ;;  %s54_s26 = int_to_ptr.vmem [resolvable:$true] %s53_s26 }
  0x11   :  { %s3523_s27 = scalar_lea.vmem %s54_s26, 4096  ;;  %p3528_p6 = scmp.lt.s32.totalorder %s54_s26, %s54_s26 }
  0x12   :  { %p3524_p5 = scmp.ne.s32.totalorder %s54_s26, %s3523_s27  ;;  %p3529_p7 = scmp.lt.s32.totalorder %s3523_s27, %s3523_s27 }
  0x14   :  { %p3530_p8 = por %p3529_p7, %p3528_p6 }
  0x16   :  { %p3531_p9 = pnand %p3530_p8, %p3524_p5 }
  0x18   :  { %3534 = shalt.err (!%p3531_p9)
}
  0x19   :  { %s3627_s28 = smov 64   ;;  %s3628_s29 = smov 4  }
  0x1a   :  { %59 = dma.hbm_to_vmem [thread:$0]  %s3851_s3, 4096, %s54_s26, [#allocation9], %s3627_s28, %s3627_s28, %s3628_s29  }
  0x1b   :  { %s3629_s7 = smov [#allocation2]   ;;  %s3630_s9 = smov [#allocation7]  }
  0x1c   :  { %s20_s8 = sshll.u32 %s3629_s7, 4  ;;  %s41_s1 = sshll.u32 %s3630_s9, 4  ;;  %s21_s8 = int_to_ptr.vmem [resolvable:$true] %s20_s8  ;;  %s42_s1 = int_to_ptr.vmem [resolvable:$true] %s41_s1 }
  0x1d   :  { %s3543_s10 = scalar_lea.vmem %s21_s8, 512  ;;  %p3548_p11 = scmp.lt.s32.totalorder %s21_s8, %s21_s8 }
  0x1e   :  { %p3544_p10 = scmp.ne.s32.totalorder %s21_s8, %s3543_s10  ;;  %p3549_p12 = scmp.lt.s32.totalorder %s3543_s10, %s3543_s10 }
  0x20   :  { %p3550_p13 = por %p3549_p12, %p3548_p11 }
  0x22   :  { %p3551_p0 = pnand %p3550_p13, %p3544_p10 }
  0x24   :  { %3554 = shalt.err (!%p3551_p0)
}
  0x25   :  { %23 = dma.hbm_to_vmem [thread:$0]  %s3848_s0, 512, %s21_s8, [#allocation3]  }
  0x26   :  { %s3563_s13 = scalar_lea.vmem %s42_s1, 16384  ;;  %p3568_p2 = scmp.lt.s32.totalorder %s42_s1, %s42_s1 }
  0x27   :  { %p3564_p1 = scmp.ne.s32.totalorder %s42_s1, %s3563_s13  ;;  %p3569_p3 = scmp.lt.s32.totalorder %s3563_s13, %s3563_s13 }
  0x29   :  { %p3570_p4 = por %p3569_p3, %p3568_p2 }
  0x2b   :  { %p3571_p5 = pnand %p3570_p4, %p3564_p1 }
  0x2d   :  { %3574 = shalt.err (!%p3571_p5)
}
  0x2e   :  { %47 = dma.hbm_to_vmem [thread:$0]  %s3850_s2, 16384, %s42_s1, [#allocation6], %s3624_s21, %s3624_s21, %s3625_s22  }
  0x2f   :  { %s3631_s15 = smov [#allocation10]  }
  0x30   :  { %s66_s16 = sshll.u32 %s3631_s15, 4  ;;  %s67_s16 = int_to_ptr.vmem [resolvable:$true] %s66_s16 }
  0x31   :  { %s3583_s17 = scalar_lea.vmem %s67_s16, 256  ;;  %p3588_p7 = scmp.lt.s32.totalorder %s67_s16, %s67_s16 }
  0x32   :  { %p3584_p6 = scmp.ne.s32.totalorder %s67_s16, %s3583_s17  ;;  %p3589_p8 = scmp.lt.s32.totalorder %s3583_s17, %s3583_s17 }
  0x34   :  { %p3590_p9 = por %p3589_p8, %p3588_p7 }
  0x36   :  { %p3591_p10 = pnand %p3590_p9, %p3584_p6 }
  0x38   :  { %3594 = shalt.err (!%p3591_p10)
}
  0x39   :  { %69 = dma.hbm_to_vmem [thread:$0]  %s3852_s4, 256, %s67_s16, [#allocation9]  }
  0x3a   :  { %3615 = dma.done.wait [#allocation3], 512  }
  0x3b   :  { %3616 = vsyncadd [#allocation3], 4294966784 }
  0x3c   :  { %3617 = dma.done.wait [#allocation6], 32768  }
  0x3d   :  { %3618 = vsyncadd [#allocation6], 4294934528 }
  0x3e   :  { %3619 = dma.done.wait [#allocation9], 4352  }
  0x3f   :  { %3620 = vsyncadd [#allocation9], 4294962944  ;;  %v3061_v0 = vld [vmem:[#allocation5 + $0xe4] ss:$16 sps:$4 sm:$0xff]   ;;  %v3065_v2 = vld [vmem:[#allocation5 + $0xe0] ss:$16 sps:$4 sm:$0xff]  }
  0x40   :  { %v3063_v1 = vld [vmem:[#allocation5 + $0x2e4] ss:$16 sps:$4 sm:$0xff]   ;;  %869 = vmatprep.subr.bf16.mxu0 %v3061_v0  ;;  %v3066_v3 = vld [vmem:[#allocation5 + $0x2e0] ss:$16 sps:$4 sm:$0xff]   ;;  %v94_v46 = vld [vmem:[#allocation2 + $0x8] sm:$0xff]  ;;  %s3633_s2 = smov [#allocation11]  }
  0x41   :  { %910 = vmatprep.subr.bf16.mxu1 %v3063_v1  ;;  %v3067_v4 = vld [vmem:[#allocation5 + $0xc4] ss:$16 sps:$4 sm:$0xff]   ;;  %870 = vmatpush1.bf16.msra.mxu0 %v3065_v2  ;;  %v3071_v6 = vld [vmem:[#allocation5 + $0xc0] ss:$16 sps:$4 sm:$0xff]   ;;  %v3685_v49 = vpack.c.bf16 %v94_v46, %v94_v46  ;;  %v96_v50 = vld [vmem:[#allocation2 + $0x18] sm:$0xff]  ;;  %s2707_s4 = sshll.u32 %s3633_s2, 4  ;;  %s2708_s4 = int_to_ptr.vmem [resolvable:$true] %s2707_s4 }
  0x42   :  { %911 = vmatpush1.bf16.msra.mxu1 %v3066_v3  ;;  %v3069_v5 = vld [vmem:[#allocation5 + $0x2c4] ss:$16 sps:$4 sm:$0xff]   ;;  %871 = vmatprep.subr.bf16.mxu0 %v3067_v4  ;;  %v3072_v7 = vld [vmem:[#allocation5 + $0x2c0] ss:$16 sps:$4 sm:$0xff]   ;;  %v100_v52 = vpack.c.bf16 %v96_v50, %v96_v50  ;;  %v3211_v46 = vld [vmem:[#allocation5 + $0x1c8] ss:$16 sps:$4 sm:$0xff]   ;;  %p3600_p12 = scmp.lt.s32.totalorder %s2708_s4, %s2708_s4 }
  0x43   :  { %912 = vmatprep.subr.bf16.mxu1 %v3069_v5  ;;  %v3073_v8 = vld [vmem:[#allocation5 + $0xa4] ss:$16 sps:$4 sm:$0xff]   ;;  %v3077_v10 = vld [vmem:[#allocation5 + $0xa0] ss:$16 sps:$4 sm:$0xff]   ;;  %901 = vmatprep.mubr.bf16.mxu0 %v3685_v49  ;;  %v3217_v50 = vld [vmem:[#allocation5 + $0x1a8] ss:$16 sps:$4 sm:$0xff]  }
  0x44   :  { %v3075_v9 = vld [vmem:[#allocation5 + $0x2a4] ss:$16 sps:$4 sm:$0xff]   ;;  %v3078_v11 = vld [vmem:[#allocation5 + $0x2a0] ss:$16 sps:$4 sm:$0xff]   ;;  %942 = vmatprep.mubr.bf16.mxu1 %v100_v52  ;;  %s3595_s19 = scalar_lea.vmem %s2708_s4, 128 }
  0x45   :  { %872 = vmatpush1.bf16.msra.mxu0 %v3071_v6  ;;  %v3079_v12 = vld [vmem:[#allocation5 + $0x84] ss:$16 sps:$4 sm:$0xff]   ;;  %v3083_v14 = vld [vmem:[#allocation5 + $0x80] ss:$16 sps:$4 sm:$0xff]   ;;  %v3159_v6 = vld [vmem:[#allocation5 + $0xec] ss:$16 sps:$4 sm:$0xff]   ;;  %p3596_p11 = scmp.ne.s32.totalorder %s2708_s4, %s3595_s19  ;;  %p3601_p13 = scmp.lt.s32.totalorder %s3595_s19, %s3595_s19 }
  0x46   :  { %913 = vmatpush1.bf16.msra.mxu1 %v3072_v7  ;;  %873 = vmatprep.subr.bf16.mxu0 %v3073_v8  ;;  %v3081_v13 = vld [vmem:[#allocation5 + $0x284] ss:$16 sps:$4 sm:$0xff]   ;;  %v3084_v15 = vld [vmem:[#allocation5 + $0x280] ss:$16 sps:$4 sm:$0xff]   ;;  %v3162_v7 = vld [vmem:[#allocation5 + $0x2ec] ss:$16 sps:$4 sm:$0xff]  }
  0x47   :  { %914 = vmatprep.subr.bf16.mxu1 %v3075_v9  ;;  %v3085_v16 = vld [vmem:[#allocation5 + $0x64] ss:$16 sps:$4 sm:$0xff]   ;;  %v3089_v18 = vld [vmem:[#allocation5 + $0x60] ss:$16 sps:$4 sm:$0xff]   ;;  %p3602_p0 = por %p3601_p13, %p3600_p12 }
  0x48   :  { %v3087_v17 = vld [vmem:[#allocation5 + $0x264] ss:$16 sps:$4 sm:$0xff]   ;;  %v3090_v19 = vld [vmem:[#allocation5 + $0x260] ss:$16 sps:$4 sm:$0xff]  }
  0x49   :  { %874 = vmatpush1.bf16.msra.mxu0 %v3077_v10  ;;  %v3091_v20 = vld [vmem:[#allocation5 + $0x44] ss:$16 sps:$4 sm:$0xff]   ;;  %v3095_v22 = vld [vmem:[#allocation5 + $0x40] ss:$16 sps:$4 sm:$0xff]   ;;  %v3157_v10 = vld [vmem:[#allocation5 + $0xe8] ss:$16 sps:$4 sm:$0xff]   ;;  %p3603_p1 = pnand %p3602_p0, %p3596_p11 }
  0x4a   :  { %915 = vmatpush1.bf16.msra.mxu1 %v3078_v11  ;;  %875 = vmatprep.subr.bf16.mxu0 %v3079_v12  ;;  %v3093_v21 = vld [vmem:[#allocation5 + $0x244] ss:$16 sps:$4 sm:$0xff]   ;;  %v3096_v23 = vld [vmem:[#allocation5 + $0x240] ss:$16 sps:$4 sm:$0xff]   ;;  %v3160_v11 = vld [vmem:[#allocation5 + $0x2e8] ss:$16 sps:$4 sm:$0xff]  }
  0x4b   :  { %916 = vmatprep.subr.bf16.mxu1 %v3081_v13  ;;  %v3097_v24 = vld [vmem:[#allocation5 + $0x24] ss:$16 sps:$4 sm:$0xff]   ;;  %v3101_v26 = vld [vmem:[#allocation5 + $0x20] ss:$16 sps:$4 sm:$0xff]   ;;  %v3165_v12 = vld [vmem:[#allocation5 + $0xcc] ss:$16 sps:$4 sm:$0xff]  }
  0x4c   :  { %v3099_v25 = vld [vmem:[#allocation5 + $0x224] ss:$16 sps:$4 sm:$0xff]   ;;  %v3102_v27 = vld [vmem:[#allocation5 + $0x220] ss:$16 sps:$4 sm:$0xff]   ;;  %v3168_v13 = vld [vmem:[#allocation5 + $0x2cc] ss:$16 sps:$4 sm:$0xff]  }
  0x4d   :  { %876 = vmatpush1.bf16.msra.mxu0 %v3083_v14  ;;  %v3103_v28 = vld [vmem:[#allocation5 + $0x4] ss:$16 sps:$4 sm:$0xff]   ;;  %v3107_v30 = vld [vmem:[#allocation5] ss:$16 sps:$4 sm:$0xff]   ;;  %v3163_v14 = vld [vmem:[#allocation5 + $0xc8] ss:$16 sps:$4 sm:$0xff]  }
  0x4e   :  { %917 = vmatpush1.bf16.msra.mxu1 %v3084_v15  ;;  %877 = vmatprep.subr.bf16.mxu0 %v3085_v16  ;;  %v3105_v29 = vld [vmem:[#allocation5 + $0x204] ss:$16 sps:$4 sm:$0xff]   ;;  %v3108_v31 = vld [vmem:[#allocation5 + $0x200] ss:$16 sps:$4 sm:$0xff]   ;;  %v3166_v15 = vld [vmem:[#allocation5 + $0x2c8] ss:$16 sps:$4 sm:$0xff]  }
  0x4f   :  { %918 = vmatprep.subr.bf16.mxu1 %v3087_v17  ;;  %v3109_v32 = vld [vmem:[#allocation5 + $0x1e4] ss:$16 sps:$4 sm:$0xff]   ;;  %v3113_v34 = vld [vmem:[#allocation5 + $0x1e0] ss:$16 sps:$4 sm:$0xff]   ;;  %v3171_v16 = vld [vmem:[#allocation5 + $0xac] ss:$16 sps:$4 sm:$0xff]  }
  0x50   :  { %v3111_v33 = vld [vmem:[#allocation5 + $0x3e4] ss:$16 sps:$4 sm:$0xff]   ;;  %v3114_v35 = vld [vmem:[#allocation5 + $0x3e0] ss:$16 sps:$4 sm:$0xff]   ;;  %v3174_v17 = vld [vmem:[#allocation5 + $0x2ac] ss:$16 sps:$4 sm:$0xff]  }
  0x51   :  { %878 = vmatpush1.bf16.msra.mxu0 %v3089_v18  ;;  %v3115_v36 = vld [vmem:[#allocation5 + $0x1c4] ss:$16 sps:$4 sm:$0xff]   ;;  %v3119_v38 = vld [vmem:[#allocation5 + $0x1c0] ss:$16 sps:$4 sm:$0xff]   ;;  %v3169_v18 = vld [vmem:[#allocation5 + $0xa8] ss:$16 sps:$4 sm:$0xff]  }
  0x52   :  { %919 = vmatpush1.bf16.msra.mxu1 %v3090_v19  ;;  %879 = vmatprep.subr.bf16.mxu0 %v3091_v20  ;;  %v3117_v37 = vld [vmem:[#allocation5 + $0x3c4] ss:$16 sps:$4 sm:$0xff]   ;;  %v3120_v39 = vld [vmem:[#allocation5 + $0x3c0] ss:$16 sps:$4 sm:$0xff]   ;;  %v3172_v19 = vld [vmem:[#allocation5 + $0x2a8] ss:$16 sps:$4 sm:$0xff]  }
  0x53   :  { %920 = vmatprep.subr.bf16.mxu1 %v3093_v21  ;;  %v3121_v40 = vld [vmem:[#allocation5 + $0x1a4] ss:$16 sps:$4 sm:$0xff]   ;;  %v3125_v42 = vld [vmem:[#allocation5 + $0x1a0] ss:$16 sps:$4 sm:$0xff]   ;;  %v3177_v20 = vld [vmem:[#allocation5 + $0x8c] ss:$16 sps:$4 sm:$0xff]  }
  0x54   :  { %v3123_v41 = vld [vmem:[#allocation5 + $0x3a4] ss:$16 sps:$4 sm:$0xff]   ;;  %v3126_v43 = vld [vmem:[#allocation5 + $0x3a0] ss:$16 sps:$4 sm:$0xff]   ;;  %v3180_v21 = vld [vmem:[#allocation5 + $0x28c] ss:$16 sps:$4 sm:$0xff]  }
  0x55   :  { %880 = vmatpush1.bf16.msra.mxu0 %v3095_v22  ;;  %v3127_v44 = vld [vmem:[#allocation5 + $0x184] ss:$16 sps:$4 sm:$0xff]   ;;  %v3131_v47 = vld [vmem:[#allocation5 + $0x180] ss:$16 sps:$4 sm:$0xff]   ;;  %v3175_v22 = vld [vmem:[#allocation5 + $0x88] ss:$16 sps:$4 sm:$0xff]  }
  0x56   :  { %921 = vmatpush1.bf16.msra.mxu1 %v3096_v23  ;;  %881 = vmatprep.subr.bf16.mxu0 %v3097_v24  ;;  %v3129_v45 = vld [vmem:[#allocation5 + $0x384] ss:$16 sps:$4 sm:$0xff]   ;;  %v3132_v48 = vld [vmem:[#allocation5 + $0x380] ss:$16 sps:$4 sm:$0xff]   ;;  %v3178_v23 = vld [vmem:[#allocation5 + $0x288] ss:$16 sps:$4 sm:$0xff]  }
  0x57   :  { %922 = vmatprep.subr.bf16.mxu1 %v3099_v25  ;;  %v3133_v51 = vld [vmem:[#allocation5 + $0x164] ss:$16 sps:$4 sm:$0xff]   ;;  %v3137_v54 = vld [vmem:[#allocation5 + $0x160] ss:$16 sps:$4 sm:$0xff]   ;;  %v3183_v24 = vld [vmem:[#allocation5 + $0x6c] ss:$16 sps:$4 sm:$0xff]  }
  0x58   :  { %v3135_v53 = vld [vmem:[#allocation5 + $0x364] ss:$16 sps:$4 sm:$0xff]   ;;  %v3138_v55 = vld [vmem:[#allocation5 + $0x360] ss:$16 sps:$4 sm:$0xff]   ;;  %v3186_v25 = vld [vmem:[#allocation5 + $0x26c] ss:$16 sps:$4 sm:$0xff]  }
  0x59   :  { %882 = vmatpush1.bf16.msra.mxu0 %v3101_v26  ;;  %v3139_v56 = vld [vmem:[#allocation5 + $0x144] ss:$16 sps:$4 sm:$0xff]   ;;  %v3143_v58 = vld [vmem:[#allocation5 + $0x140] ss:$16 sps:$4 sm:$0xff]   ;;  %v3181_v26 = vld [vmem:[#allocation5 + $0x68] ss:$16 sps:$4 sm:$0xff]  }
  0x5a   :  { %923 = vmatpush1.bf16.msra.mxu1 %v3102_v27  ;;  %883 = vmatprep.subr.bf16.mxu0 %v3103_v28  ;;  %v3141_v57 = vld [vmem:[#allocation5 + $0x344] ss:$16 sps:$4 sm:$0xff]   ;;  %v3144_v59 = vld [vmem:[#allocation5 + $0x340] ss:$16 sps:$4 sm:$0xff]   ;;  %v3184_v27 = vld [vmem:[#allocation5 + $0x268] ss:$16 sps:$4 sm:$0xff]  }
  0x5b   :  { %924 = vmatprep.subr.bf16.mxu1 %v3105_v29  ;;  %v3145_v60 = vld [vmem:[#allocation5 + $0x124] ss:$16 sps:$4 sm:$0xff]   ;;  %v3149_v62 = vld [vmem:[#allocation5 + $0x120] ss:$16 sps:$4 sm:$0xff]   ;;  %v3189_v28 = vld [vmem:[#allocation5 + $0x4c] ss:$16 sps:$4 sm:$0xff]  }
  0x5c   :  { %v3147_v61 = vld [vmem:[#allocation5 + $0x324] ss:$16 sps:$4 sm:$0xff]   ;;  %v3150_v63 = vld [vmem:[#allocation5 + $0x320] ss:$16 sps:$4 sm:$0xff]   ;;  %v3192_v29 = vld [vmem:[#allocation5 + $0x24c] ss:$16 sps:$4 sm:$0xff]  }
  0x5d   :  { %884 = vmatpush1.bf16.msra.mxu0 %v3107_v30  ;;  %v3151_v0 = vld [vmem:[#allocation5 + $0x104] ss:$16 sps:$4 sm:$0xff]   ;;  %v3155_v2 = vld [vmem:[#allocation5 + $0x100] ss:$16 sps:$4 sm:$0xff]   ;;  %v3187_v30 = vld [vmem:[#allocation5 + $0x48] ss:$16 sps:$4 sm:$0xff]  }
  0x5e   :  { %925 = vmatpush1.bf16.msra.mxu1 %v3108_v31  ;;  %885 = vmatprep.subr.bf16.mxu0 %v3109_v32  ;;  %v3153_v1 = vld [vmem:[#allocation5 + $0x304] ss:$16 sps:$4 sm:$0xff]   ;;  %v3156_v3 = vld [vmem:[#allocation5 + $0x300] ss:$16 sps:$4 sm:$0xff]   ;;  %v3190_v31 = vld [vmem:[#allocation5 + $0x248] ss:$16 sps:$4 sm:$0xff]  }
  0x5f   :  { %926 = vmatprep.subr.bf16.mxu1 %v3111_v33  ;;  %v93_v4 = vld [vmem:[#allocation2] sm:$0xff]  ;;  %v95_v5 = vld [vmem:[#allocation2 + $0x10] sm:$0xff]  ;;  %v3195_v32 = vld [vmem:[#allocation5 + $0x2c] ss:$16 sps:$4 sm:$0xff]  }
  0x60   :  { %v3688_v8 = vpack.c.bf16 %v93_v4, %v93_v4  ;;  %v3690_v9 = vpack.c.bf16 %v95_v5, %v95_v5  ;;  %v3198_v33 = vld [vmem:[#allocation5 + $0x22c] ss:$16 sps:$4 sm:$0xff]  }
  0x61   :  { %886 = vmatpush2.bf16.msra.mxu0 %v3113_v34  ;;  %v3193_v34 = vld [vmem:[#allocation5 + $0x28] ss:$16 sps:$4 sm:$0xff]   ;;  %v3249_v4 = vld [vmem:[#allocation5 + $0x10c] ss:$16 sps:$4 sm:$0xff]  }
  0x62   :  { %927 = vmatpush2.bf16.msra.mxu1 %v3114_v35  ;;  %887 = vmatprep.subr.bf16.mxu0 %v3115_v36  ;;  %v3196_v35 = vld [vmem:[#allocation5 + $0x228] ss:$16 sps:$4 sm:$0xff]   ;;  %v3201_v36 = vld [vmem:[#allocation5 + $0xc] ss:$16 sps:$4 sm:$0xff]  }
  0x63   :  { %928 = vmatprep.subr.bf16.mxu1 %v3117_v37  ;;  %v3204_v37 = vld [vmem:[#allocation5 + $0x20c] ss:$16 sps:$4 sm:$0xff]  }
  0x64   :  { %v3252_v5 = vld [vmem:[#allocation5 + $0x30c] ss:$16 sps:$4 sm:$0xff]  }
  0x65   :  { %888 = vmatpush2.bf16.msra.mxu0 %v3119_v38  ;;  %v3199_v38 = vld [vmem:[#allocation5 + $0x8] ss:$16 sps:$4 sm:$0xff]  }
  0x66   :  { %929 = vmatpush2.bf16.msra.mxu1 %v3120_v39  ;;  %889 = vmatprep.subr.bf16.mxu0 %v3121_v40  ;;  %v3202_v39 = vld [vmem:[#allocation5 + $0x208] ss:$16 sps:$4 sm:$0xff]   ;;  %v3207_v40 = vld [vmem:[#allocation5 + $0x1ec] ss:$16 sps:$4 sm:$0xff]  }
  0x67   :  { %930 = vmatprep.subr.bf16.mxu1 %v3123_v41  ;;  %v3210_v41 = vld [vmem:[#allocation5 + $0x3ec] ss:$16 sps:$4 sm:$0xff]  }
  0x69   :  { %890 = vmatpush2.bf16.msra.mxu0 %v3125_v42  ;;  %v3205_v42 = vld [vmem:[#allocation5 + $0x1e8] ss:$16 sps:$4 sm:$0xff]  }
  0x6a   :  { %931 = vmatpush2.bf16.msra.mxu1 %v3126_v43  ;;  %891 = vmatprep.subr.bf16.mxu0 %v3127_v44  ;;  %v3208_v43 = vld [vmem:[#allocation5 + $0x3e8] ss:$16 sps:$4 sm:$0xff]   ;;  %v3213_v44 = vld [vmem:[#allocation5 + $0x1cc] ss:$16 sps:$4 sm:$0xff]  }
  0x6b   :  { %932 = vmatprep.subr.bf16.mxu1 %v3129_v45  ;;  %v3216_v45 = vld [vmem:[#allocation5 + $0x3cc] ss:$16 sps:$4 sm:$0xff]  }
  0x6d   :  { %892 = vmatpush2.bf16.msra.mxu0 %v3131_v47  ;;  %v3214_v47 = vld [vmem:[#allocation5 + $0x3c8] ss:$16 sps:$4 sm:$0xff]  }
  0x6e   :  { %933 = vmatpush2.bf16.msra.mxu1 %v3132_v48  ;;  %893 = vmatprep.subr.bf16.mxu0 %v3133_v51  ;;  %v3219_v48 = vld [vmem:[#allocation5 + $0x1ac] ss:$16 sps:$4 sm:$0xff]   ;;  %v3220_v51 = vld [vmem:[#allocation5 + $0x3a8] ss:$16 sps:$4 sm:$0xff]  }
  0x6f   :  { %934 = vmatprep.subr.bf16.mxu1 %v3135_v53  ;;  %v3228_v53 = vld [vmem:[#allocation5 + $0x38c] ss:$16 sps:$4 sm:$0xff]  }
  0x71   :  { %894 = vmatpush2.bf16.msra.mxu0 %v3137_v54  ;;  %v3223_v54 = vld [vmem:[#allocation5 + $0x188] ss:$16 sps:$4 sm:$0xff]  }
  0x72   :  { %935 = vmatpush2.bf16.msra.mxu1 %v3138_v55  ;;  %895 = vmatprep.subr.bf16.mxu0 %v3139_v56  ;;  %v3226_v55 = vld [vmem:[#allocation5 + $0x388] ss:$16 sps:$4 sm:$0xff]   ;;  %v3231_v56 = vld [vmem:[#allocation5 + $0x16c] ss:$16 sps:$4 sm:$0xff]  }
  0x73   :  { %936 = vmatprep.subr.bf16.mxu1 %v3141_v57  ;;  %v3234_v57 = vld [vmem:[#allocation5 + $0x36c] ss:$16 sps:$4 sm:$0xff]  }
  0x75   :  { %896 = vmatpush2.bf16.msra.mxu0 %v3143_v58  ;;  %v3229_v58 = vld [vmem:[#allocation5 + $0x168] ss:$16 sps:$4 sm:$0xff]  }
  0x76   :  { %937 = vmatpush2.bf16.msra.mxu1 %v3144_v59  ;;  %897 = vmatprep.subr.bf16.mxu0 %v3145_v60  ;;  %v3232_v59 = vld [vmem:[#allocation5 + $0x368] ss:$16 sps:$4 sm:$0xff]   ;;  %v3237_v60 = vld [vmem:[#allocation5 + $0x14c] ss:$16 sps:$4 sm:$0xff]  }
  0x77   :  { %938 = vmatprep.subr.bf16.mxu1 %v3147_v61  ;;  %v3240_v61 = vld [vmem:[#allocation5 + $0x34c] ss:$16 sps:$4 sm:$0xff]  }
  0x79   :  { %898 = vmatpush2.bf16.msra.mxu0 %v3149_v62  ;;  %v3235_v62 = vld [vmem:[#allocation5 + $0x148] ss:$16 sps:$4 sm:$0xff]  }
  0x7a   :  { %939 = vmatpush2.bf16.msra.mxu1 %v3150_v63  ;;  %899 = vmatprep.subr.bf16.mxu0 %v3151_v0  ;;  %v3238_v63 = vld [vmem:[#allocation5 + $0x348] ss:$16 sps:$4 sm:$0xff]   ;;  %v3243_v0 = vld [vmem:[#allocation5 + $0x12c] ss:$16 sps:$4 sm:$0xff]  }
  0x7b   :  { %940 = vmatprep.subr.bf16.mxu1 %v3153_v1  ;;  %v3246_v1 = vld [vmem:[#allocation5 + $0x32c] ss:$16 sps:$4 sm:$0xff]  }
  0x7d   :  { %900 = vmatpush2.bf16.msra.mxu0 %v3155_v2  ;;  %v3241_v2 = vld [vmem:[#allocation5 + $0x128] ss:$16 sps:$4 sm:$0xff]  }
  0x7e   :  { %941 = vmatpush2.bf16.msra.mxu1 %v3156_v3  ;;  %951 = vmatprep.subr.bf16.mxu0 %v3159_v6  ;;  %v3244_v3 = vld [vmem:[#allocation5 + $0x328] ss:$16 sps:$4 sm:$0xff]  }
  0x7f   :  { %992 = vmatprep.subr.bf16.mxu1 %v3162_v7  ;;  %v3247_v6 = vld [vmem:[#allocation5 + $0x108] ss:$16 sps:$4 sm:$0xff]  }
  0x80   :  { %902 = vmatmul.mubr.bf16.vlgmr.msra.gmra.mxu0 %v3688_v8  ;;  %v3250_v7 = vld [vmem:[#allocation5 + $0x308] ss:$16 sps:$4 sm:$0xff]  }
  0x81   :  { %943 = vmatmul.mubr.bf16.vlgmr.msra.gmra.mxu1 %v3690_v9  ;;  %952 = vmatpush1.bf16.msra.mxu0 %v3157_v10  ;;  %v3253_v10 = vld [vmem:[#allocation7 + $0xe0] ss:$16 sps:$4 sm:$0xff]  }
  0x82   :  { %993 = vmatpush1.bf16.msra.mxu1 %v3160_v11  ;;  %953 = vmatprep.subr.bf16.mxu0 %v3165_v12  ;;  %v3255_v11 = vld [vmem:[#allocation7 + $0xe4] ss:$16 sps:$4 sm:$0xff]   ;;  %v3256_v12 = vld [vmem:[#allocation7 + $0x2e0] ss:$16 sps:$4 sm:$0xff]  }
  0x83   :  { %994 = vmatprep.subr.bf16.mxu1 %v3168_v13  ;;  %983 = vmatprep.mubr.bf16.mxu0 %v3685_v49  ;;  %v3222_v49 = vld [vmem:[#allocation5 + $0x3ac] ss:$16 sps:$4 sm:$0xff]   ;;  %v3258_v13 = vld [vmem:[#allocation7 + $0x2e4] ss:$16 sps:$4 sm:$0xff]  }
  0x84   :  { %1024 = vmatprep.mubr.bf16.mxu1 %v100_v52  ;;  %v3225_v52 = vld [vmem:[#allocation5 + $0x18c] ss:$16 sps:$4 sm:$0xff]  }
  0x85   :  { %954 = vmatpush1.bf16.msra.mxu0 %v3163_v14  ;;  %v3261_v14 = vld [vmem:[#allocation7 + $0xc4] ss:$16 sps:$4 sm:$0xff]  }
  0x86   :  { %995 = vmatpush1.bf16.msra.mxu1 %v3166_v15  ;;  %955 = vmatprep.subr.bf16.mxu0 %v3171_v16  ;;  %v3264_v15 = vld [vmem:[#allocation7 + $0x2c4] ss:$16 sps:$4 sm:$0xff]   ;;  %v3259_v16 = vld [vmem:[#allocation7 + $0xc0] ss:$16 sps:$4 sm:$0xff]  }
  0x87   :  { %996 = vmatprep.subr.bf16.mxu1 %v3174_v17  ;;  %v3262_v17 = vld [vmem:[#allocation7 + $0x2c0] ss:$16 sps:$4 sm:$0xff]  }
  0x89   :  { %956 = vmatpush1.bf16.msra.mxu0 %v3169_v18  ;;  %v3267_v18 = vld [vmem:[#allocation7 + $0xa4] ss:$16 sps:$4 sm:$0xff]  }
  0x8a   :  { %997 = vmatpush1.bf16.msra.mxu1 %v3172_v19  ;;  %957 = vmatprep.subr.bf16.mxu0 %v3177_v20  ;;  %v3265_v19 = vld [vmem:[#allocation7 + $0xa0] ss:$16 sps:$4 sm:$0xff]   ;;  %v3273_v20 = vld [vmem:[#allocation7 + $0x84] ss:$16 sps:$4 sm:$0xff]  }
  0x8b   :  { %998 = vmatprep.subr.bf16.mxu1 %v3180_v21  ;;  %v3276_v21 = vld [vmem:[#allocation7 + $0x284] ss:$16 sps:$4 sm:$0xff]  }
  0x8d   :  { %958 = vmatpush1.bf16.msra.mxu0 %v3175_v22  ;;  %v3271_v22 = vld [vmem:[#allocation7 + $0x80] ss:$16 sps:$4 sm:$0xff]  }
  0x8e   :  { %999 = vmatpush1.bf16.msra.mxu1 %v3178_v23  ;;  %959 = vmatprep.subr.bf16.mxu0 %v3183_v24  ;;  %v3274_v23 = vld [vmem:[#allocation7 + $0x280] ss:$16 sps:$4 sm:$0xff]   ;;  %v3279_v24 = vld [vmem:[#allocation7 + $0x64] ss:$16 sps:$4 sm:$0xff]  }
  0x8f   :  { %1000 = vmatprep.subr.bf16.mxu1 %v3186_v25  ;;  %v3282_v25 = vld [vmem:[#allocation7 + $0x264] ss:$16 sps:$4 sm:$0xff]  }
  0x91   :  { %960 = vmatpush1.bf16.msra.mxu0 %v3181_v26  ;;  %v3277_v26 = vld [vmem:[#allocation7 + $0x60] ss:$16 sps:$4 sm:$0xff]  }
  0x92   :  { %1001 = vmatpush1.bf16.msra.mxu1 %v3184_v27  ;;  %961 = vmatprep.subr.bf16.mxu0 %v3189_v28  ;;  %v3280_v27 = vld [vmem:[#allocation7 + $0x260] ss:$16 sps:$4 sm:$0xff]   ;;  %v3285_v28 = vld [vmem:[#allocation7 + $0x44] ss:$16 sps:$4 sm:$0xff]  }
  0x93   :  { %1002 = vmatprep.subr.bf16.mxu1 %v3192_v29  ;;  %v3288_v29 = vld [vmem:[#allocation7 + $0x244] ss:$16 sps:$4 sm:$0xff]  }
  0x95   :  { %962 = vmatpush1.bf16.msra.mxu0 %v3187_v30  ;;  %v3283_v30 = vld [vmem:[#allocation7 + $0x40] ss:$16 sps:$4 sm:$0xff]  }
  0x96   :  { %1003 = vmatpush1.bf16.msra.mxu1 %v3190_v31  ;;  %963 = vmatprep.subr.bf16.mxu0 %v3195_v32  ;;  %v3286_v31 = vld [vmem:[#allocation7 + $0x240] ss:$16 sps:$4 sm:$0xff]   ;;  %v3291_v32 = vld [vmem:[#allocation7 + $0x24] ss:$16 sps:$4 sm:$0xff]  }
  0x97   :  { %1004 = vmatprep.subr.bf16.mxu1 %v3198_v33  ;;  %v3294_v33 = vld [vmem:[#allocation7 + $0x224] ss:$16 sps:$4 sm:$0xff]  }
  0x99   :  { %964 = vmatpush1.bf16.msra.mxu0 %v3193_v34  ;;  %v3289_v34 = vld [vmem:[#allocation7 + $0x20] ss:$16 sps:$4 sm:$0xff]  }
  0x9a   :  { %1005 = vmatpush1.bf16.msra.mxu1 %v3196_v35  ;;  %965 = vmatprep.subr.bf16.mxu0 %v3201_v36  ;;  %v3292_v35 = vld [vmem:[#allocation7 + $0x220] ss:$16 sps:$4 sm:$0xff]   ;;  %v3297_v36 = vld [vmem:[#allocation7 + $0x4] ss:$16 sps:$4 sm:$0xff]  }
  0x9b   :  { %1006 = vmatprep.subr.bf16.mxu1 %v3204_v37  ;;  %v3300_v37 = vld [vmem:[#allocation7 + $0x204] ss:$16 sps:$4 sm:$0xff]  }
  0x9d   :  { %966 = vmatpush1.bf16.msra.mxu0 %v3199_v38  ;;  %v3295_v38 = vld [vmem:[#allocation7] ss:$16 sps:$4 sm:$0xff]  }
  0x9e   :  { %1007 = vmatpush1.bf16.msra.mxu1 %v3202_v39  ;;  %967 = vmatprep.subr.bf16.mxu0 %v3207_v40  ;;  %v3298_v39 = vld [vmem:[#allocation7 + $0x200] ss:$16 sps:$4 sm:$0xff]   ;;  %v3303_v40 = vld [vmem:[#allocation7 + $0x1e4] ss:$16 sps:$4 sm:$0xff]  }
  0x9f   :  { %1008 = vmatprep.subr.bf16.mxu1 %v3210_v41  ;;  %v3306_v41 = vld [vmem:[#allocation7 + $0x3e4] ss:$16 sps:$4 sm:$0xff]  }
  0xa1   :  { %968 = vmatpush2.bf16.msra.mxu0 %v3205_v42  ;;  %v3301_v42 = vld [vmem:[#allocation7 + $0x1e0] ss:$16 sps:$4 sm:$0xff]  }
  0xa2   :  { %1009 = vmatpush2.bf16.msra.mxu1 %v3208_v43  ;;  %969 = vmatprep.subr.bf16.mxu0 %v3213_v44  ;;  %v3304_v43 = vld [vmem:[#allocation7 + $0x3e0] ss:$16 sps:$4 sm:$0xff]   ;;  %v3309_v44 = vld [vmem:[#allocation7 + $0x1c4] ss:$16 sps:$4 sm:$0xff]  }
  0xa3   :  { %1010 = vmatprep.subr.bf16.mxu1 %v3216_v45  ;;  %v3312_v45 = vld [vmem:[#allocation7 + $0x3c4] ss:$16 sps:$4 sm:$0xff]  }
  0xa5   :  { %970 = vmatpush2.bf16.msra.mxu0 %v3211_v46  ;;  %v3307_v46 = vld [vmem:[#allocation7 + $0x1c0] ss:$16 sps:$4 sm:$0xff]  }
  0xa6   :  { %1011 = vmatpush2.bf16.msra.mxu1 %v3214_v47  ;;  %971 = vmatprep.subr.bf16.mxu0 %v3219_v48  ;;  %v3310_v47 = vld [vmem:[#allocation7 + $0x3c0] ss:$16 sps:$4 sm:$0xff]   ;;  %v3315_v48 = vld [vmem:[#allocation7 + $0x1a4] ss:$16 sps:$4 sm:$0xff]  }
  0xa7   :  { %1012 = vmatprep.subr.bf16.mxu1 %v3222_v49  ;;  %v3318_v49 = vld [vmem:[#allocation7 + $0x3a4] ss:$16 sps:$4 sm:$0xff]  }
  0xa9   :  { %972 = vmatpush2.bf16.msra.mxu0 %v3217_v50  ;;  %v3313_v50 = vld [vmem:[#allocation7 + $0x1a0] ss:$16 sps:$4 sm:$0xff]  }
  0xaa   :  { %1013 = vmatpush2.bf16.msra.mxu1 %v3220_v51  ;;  %973 = vmatprep.subr.bf16.mxu0 %v3225_v52  ;;  %v3316_v51 = vld [vmem:[#allocation7 + $0x3a0] ss:$16 sps:$4 sm:$0xff]   ;;  %v3321_v52 = vld [vmem:[#allocation7 + $0x184] ss:$16 sps:$4 sm:$0xff]  }
  0xab   :  { %1014 = vmatprep.subr.bf16.mxu1 %v3228_v53  ;;  %v3324_v53 = vld [vmem:[#allocation7 + $0x384] ss:$16 sps:$4 sm:$0xff]  }
  0xad   :  { %974 = vmatpush2.bf16.msra.mxu0 %v3223_v54  ;;  %v3319_v54 = vld [vmem:[#allocation7 + $0x180] ss:$16 sps:$4 sm:$0xff]  }
  0xae   :  { %1015 = vmatpush2.bf16.msra.mxu1 %v3226_v55  ;;  %975 = vmatprep.subr.bf16.mxu0 %v3231_v56  ;;  %v3322_v55 = vld [vmem:[#allocation7 + $0x380] ss:$16 sps:$4 sm:$0xff]   ;;  %v3327_v56 = vld [vmem:[#allocation7 + $0x164] ss:$16 sps:$4 sm:$0xff]  }
  0xaf   :  { %1016 = vmatprep.subr.bf16.mxu1 %v3234_v57  ;;  %v3330_v57 = vld [vmem:[#allocation7 + $0x364] ss:$16 sps:$4 sm:$0xff]  }
  0xb1   :  { %976 = vmatpush2.bf16.msra.mxu0 %v3229_v58  ;;  %v3325_v58 = vld [vmem:[#allocation7 + $0x160] ss:$16 sps:$4 sm:$0xff]  }
  0xb2   :  { %1017 = vmatpush2.bf16.msra.mxu1 %v3232_v59  ;;  %977 = vmatprep.subr.bf16.mxu0 %v3237_v60  ;;  %v3328_v59 = vld [vmem:[#allocation7 + $0x360] ss:$16 sps:$4 sm:$0xff]   ;;  %v3333_v60 = vld [vmem:[#allocation7 + $0x144] ss:$16 sps:$4 sm:$0xff]  }
  0xb3   :  { %1018 = vmatprep.subr.bf16.mxu1 %v3240_v61  ;;  %v3331_v61 = vld [vmem:[#allocation7 + $0x140] ss:$16 sps:$4 sm:$0xff]  }
  0xb5   :  { %978 = vmatpush2.bf16.msra.mxu0 %v3235_v62  ;;  %v3334_v62 = vld [vmem:[#allocation7 + $0x340] ss:$16 sps:$4 sm:$0xff]  }
  0xb6   :  { %1019 = vmatpush2.bf16.msra.mxu1 %v3238_v63  ;;  %979 = vmatprep.subr.bf16.mxu0 %v3243_v0  ;;  %v3336_v63 = vld [vmem:[#allocation7 + $0x344] ss:$16 sps:$4 sm:$0xff]  }
  0xb7   :  { %1020 = vmatprep.subr.bf16.mxu1 %v3246_v1  ;;  %v3339_v0 = vld [vmem:[#allocation7 + $0x124] ss:$16 sps:$4 sm:$0xff]  }
  0xb8   :  { %v3342_v1 = vld [vmem:[#allocation7 + $0x324] ss:$16 sps:$4 sm:$0xff]  }
  0xb9   :  { %980 = vmatpush2.bf16.msra.mxu0 %v3241_v2  ;;  %v3337_v2 = vld [vmem:[#allocation7 + $0x120] ss:$16 sps:$4 sm:$0xff]  }
  0xba   :  { %1021 = vmatpush2.bf16.msra.mxu1 %v3244_v3  ;;  %981 = vmatprep.subr.bf16.mxu0 %v3249_v4  ;;  %v3340_v3 = vld [vmem:[#allocation7 + $0x320] ss:$16 sps:$4 sm:$0xff]   ;;  %v3345_v4 = vld [vmem:[#allocation7 + $0x104] ss:$16 sps:$4 sm:$0xff]  }
  0xbb   :  { %1022 = vmatprep.subr.bf16.mxu1 %v3252_v5  ;;  %v3348_v5 = vld [vmem:[#allocation7 + $0x304] ss:$16 sps:$4 sm:$0xff]  }
  0xbd   :  { %982 = vmatpush2.bf16.msra.mxu0 %v3247_v6  ;;  %v3343_v6 = vld [vmem:[#allocation7 + $0x100] ss:$16 sps:$4 sm:$0xff]  }
  0xbe   :  { %1023 = vmatpush2.bf16.msra.mxu1 %v3250_v7  ;;  %1989 = vmatprep.subr.bf16.mxu0 %v3255_v11  ;;  %v3346_v7 = vld [vmem:[#allocation7 + $0x300] ss:$16 sps:$4 sm:$0xff]   ;;  %v3354_v11 = vld [vmem:[#allocation7 + $0x2ec] ss:$16 sps:$4 sm:$0xff]  }
  0xbf   :  { %2030 = vmatprep.subr.bf16.mxu1 %v3258_v13 }
  0xc0   :  { %984 = vmatmul.mubr.bf16.vlgmr.msra.gmra.mxu0 %v3688_v8  ;;  %v3270_v8 = vld [vmem:[#allocation7 + $0x2a4] ss:$16 sps:$4 sm:$0xff]  }
  0xc1   :  { %1025 = vmatmul.mubr.bf16.vlgmr.msra.gmra.mxu1 %v3690_v9  ;;  %1990 = vmatpush1.bf16.msra.mxu0 %v3253_v10  ;;  %v3268_v9 = vld [vmem:[#allocation7 + $0x2a0] ss:$16 sps:$4 sm:$0xff]   ;;  %v3351_v10 = vld [vmem:[#allocation7 + $0xec] ss:$16 sps:$4 sm:$0xff]  }
  0xc2   :  { %2031 = vmatpush1.bf16.msra.mxu1 %v3256_v12  ;;  %1991 = vmatprep.subr.bf16.mxu0 %v3261_v14 }
  0xc3   :  { %2032 = vmatprep.subr.bf16.mxu1 %v3264_v15 }
  0xc5   :  { %1992 = vmatpush1.bf16.msra.mxu0 %v3259_v16 }
  0xc6   :  { %2033 = vmatpush1.bf16.msra.mxu1 %v3262_v17  ;;  %1993 = vmatprep.subr.bf16.mxu0 %v3267_v18 }
  0xc7   :  { %2034 = vmatprep.subr.bf16.mxu1 %v3270_v8 }
  0xc9   :  { %1994 = vmatpush1.bf16.msra.mxu0 %v3265_v19 }
  0xca   :  { %2035 = vmatpush1.bf16.msra.mxu1 %v3268_v9  ;;  %1995 = vmatprep.subr.bf16.mxu0 %v3273_v20 }
  0xcb   :  { %2036 = vmatprep.subr.bf16.mxu1 %v3276_v21 }
  0xcd   :  { %1996 = vmatpush1.bf16.msra.mxu0 %v3271_v22 }
  0xce   :  { %2037 = vmatpush1.bf16.msra.mxu1 %v3274_v23  ;;  %1997 = vmatprep.subr.bf16.mxu0 %v3279_v24 }
  0xcf   :  { %2038 = vmatprep.subr.bf16.mxu1 %v3282_v25 }
  0xd1   :  { %1998 = vmatpush1.bf16.msra.mxu0 %v3277_v26 }
  0xd2   :  { %2039 = vmatpush1.bf16.msra.mxu1 %v3280_v27  ;;  %1999 = vmatprep.subr.bf16.mxu0 %v3285_v28 }
  0xd3   :  { %2040 = vmatprep.subr.bf16.mxu1 %v3288_v29 }
  0xd5   :  { %2000 = vmatpush1.bf16.msra.mxu0 %v3283_v30 }
  0xd6   :  { %2041 = vmatpush1.bf16.msra.mxu1 %v3286_v31  ;;  %2001 = vmatprep.subr.bf16.mxu0 %v3291_v32 }
  0xd7   :  { %2042 = vmatprep.subr.bf16.mxu1 %v3294_v33 }
  0xd9   :  { %2002 = vmatpush1.bf16.msra.mxu0 %v3289_v34 }
  0xda   :  { %2043 = vmatpush1.bf16.msra.mxu1 %v3292_v35  ;;  %2003 = vmatprep.subr.bf16.mxu0 %v3297_v36 }
  0xdb   :  { %2044 = vmatprep.subr.bf16.mxu1 %v3300_v37 }
  0xdd   :  { %2004 = vmatpush1.bf16.msra.mxu0 %v3295_v38 }
  0xde   :  { %2045 = vmatpush1.bf16.msra.mxu1 %v3298_v39  ;;  %2005 = vmatprep.subr.bf16.mxu0 %v3303_v40 }
  0xdf   :  { %2046 = vmatprep.subr.bf16.mxu1 %v3306_v41 }
  0xe1   :  { %2006 = vmatpush2.bf16.msra.mxu0 %v3301_v42 }
  0xe2   :  { %2047 = vmatpush2.bf16.msra.mxu1 %v3304_v43  ;;  %2007 = vmatprep.subr.bf16.mxu0 %v3309_v44 }
  0xe3   :  { %2048 = vmatprep.subr.bf16.mxu1 %v3312_v45 }
  0xe5   :  { %2008 = vmatpush2.bf16.msra.mxu0 %v3307_v46 }
  0xe6   :  { %2049 = vmatpush2.bf16.msra.mxu1 %v3310_v47  ;;  %2009 = vmatprep.subr.bf16.mxu0 %v3315_v48 }
  0xe7   :  { %2050 = vmatprep.subr.bf16.mxu1 %v3318_v49 }
  0xe9   :  { %2010 = vmatpush2.bf16.msra.mxu0 %v3313_v50 }
  0xea   :  { %2051 = vmatpush2.bf16.msra.mxu1 %v3316_v51  ;;  %2011 = vmatprep.subr.bf16.mxu0 %v3321_v52 }
  0xeb   :  { %2052 = vmatprep.subr.bf16.mxu1 %v3324_v53 }
  0xed   :  { %2012 = vmatpush2.bf16.msra.mxu0 %v3319_v54  ;;  %v1110_v54 = vlaneseq }
  0xee   :  { %2053 = vmatpush2.bf16.msra.mxu1 %v3322_v55  ;;  %2013 = vmatprep.subr.bf16.mxu0 %v3327_v56 }
  0xef   :  { %2054 = vmatprep.subr.bf16.mxu1 %v3330_v57  ;;  %v3709_v57 = vshrl.u32 %v1110_v54, 7 }
  0xf1   :  { %2014 = vmatpush2.bf16.msra.mxu0 %v3325_v58  ;;  %v3712_v58 = vsub.s32 0, %v3709_v57  ;;  %v3748_v54 = vsub.s32 2, %v3709_v57 }
  0xf2   :  { %2055 = vmatpush2.bf16.msra.mxu1 %v3328_v59  ;;  %2015 = vmatprep.subr.bf16.mxu0 %v3333_v60  ;;  %v3714_v59 = vld [vmem:[#allocation10] ss:$4 sm:$0xf]  ;;  %v3717_v60 = vsub.s32 1, %v3709_v57 }
  0xf3   :  { %2056 = vmatprep.subr.bf16.mxu1 %v3336_v63 }
  0xf5   :  { %2016 = vmatpush2.bf16.msra.mxu0 %v3331_v61  ;;  %v1113_v61 = vrot.slane %v3714_v59, %v3712_v58 }
  0xf6   :  { %2057 = vmatpush2.bf16.msra.mxu1 %v3334_v62  ;;  %2017 = vmatprep.subr.bf16.mxu0 %v3339_v0  ;;  %v1117_v62 = vrot.slane %v3714_v59, %v3717_v60 }
  0xf7   :  { %2058 = vmatprep.subr.bf16.mxu1 %v3342_v1 }
  0xf9   :  { %2018 = vmatpush2.bf16.msra.mxu0 %v3337_v2 }
  0xfa   :  { %2059 = vmatpush2.bf16.msra.mxu1 %v3340_v3  ;;  %2019 = vmatprep.subr.bf16.mxu0 %v3345_v4 }
  0xfb   :  { %2060 = vmatprep.subr.bf16.mxu1 %v3348_v5 }
  0xfd   :  { %2020 = vmatpush2.bf16.msra.mxu0 %v3343_v6 }
  0xfe   :  { %2061 = vmatpush2.bf16.msra.mxu1 %v3346_v7  ;;  %2071 = vmatprep.subr.bf16.mxu0 %v3351_v10 }
  0xff   :  { %2112 = vmatprep.subr.bf16.mxu1 %v3354_v11 }
 0x140   :  { %v903_v12 = vpop.f32.mrf.mxu0 }
 0x141   :  { %v944_v13 = vpop.f32.mrf.mxu1 }
 0x142   :  { %v3697_v14 = vadd.f32 %v944_v13, %v903_v12  ;;  %v905_v15 = vpop.f32.mrf.mxu0 }
 0x143   :  { %v946_v16 = vpop.f32.mrf.mxu1 }
 0x144   :  { %v1033_v17 = vrot.slane %v3697_v14, 4  ;;  %v1057_v18 = vmul.f32 %v3697_v14, %v3697_v14  ;;  %v3702_v8 = vadd.f32 %v946_v16, %v905_v15  ;;  %v907_v19 = vpop.f32.mrf.mxu0 }
 0x145   :  { %v948_v9 = vpop.f32.mrf.mxu1 }
 0x146   :  { %v1034_v20 = vadd.f32 %v1033_v17, %v3697_v14  ;;  %v1061_v21 = vrot.slane %v1057_v18, 4  ;;  %v1039_v22 = vrot.slane %v3702_v8, 4  ;;  %v1058_v23 = vmul.f32 %v3702_v8, %v3702_v8  ;;  %v908_v24 = vpop.f32.mrf.mxu0 }
 0x147   :  { %v949_v25 = vpop.f32.mrf.mxu1 }
 0x148   :  { %v1035_v26 = vrot.slane %v1034_v20, 2  ;;  %v1062_v27 = vadd.f32 %v1061_v21, %v1057_v18  ;;  %v1040_v28 = vadd.f32 %v1039_v22, %v3702_v8  ;;  %v1067_v29 = vrot.slane %v1058_v23, 4 }
 0x14a   :  { %v1036_v30 = vadd.f32 %v1035_v26, %v1034_v20  ;;  %v1063_v31 = vrot.slane %v1062_v27, 2  ;;  %v1041_v32 = vrot.slane %v1040_v28, 2  ;;  %v1068_v33 = vadd.f32 %v1067_v29, %v1058_v23 }
 0x14c   :  { %v1037_v34 = vrot.slane %v1036_v30, 1  ;;  %v1064_v35 = vadd.f32 %v1063_v31, %v1062_v27  ;;  %v1042_v36 = vadd.f32 %v1041_v32, %v1040_v28  ;;  %v1069_v37 = vrot.slane %v1068_v33, 2 }
 0x14e   :  { %v1038_v38 = vadd.f32 %v1037_v34, %v1036_v30  ;;  %v1065_v39 = vrot.slane %v1064_v35, 1  ;;  %v1043_v40 = vrot.slane %v1042_v36, 1  ;;  %v1070_v41 = vadd.f32 %v1069_v37, %v1068_v33 }
 0x150   :  { %v1066_v42 = vadd.f32 %v1065_v39, %v1064_v35  ;;  %v1085_v43 = vmul.f32 0.125, %v1038_v38  ;;  %v1044_v44 = vadd.f32 %v1043_v40, %v1042_v36  ;;  %v1071_v45 = vrot.slane %v1070_v41, 1 }
 0x152   :  { %v1089_v46 = vmul.f32 0.125, %v1066_v42  ;;  %v1093_v47 = vmul.f32 %v1085_v43, %v1085_v43  ;;  %v1072_v48 = vadd.f32 %v1071_v45, %v1070_v41  ;;  %v1086_v49 = vmul.f32 0.125, %v1044_v44 }
 0x154   :  { %v1097_v50 = vsub.f32 %v1089_v46, %v1093_v47  ;;  %v1090_v51 = vmul.f32 0.125, %v1072_v48  ;;  %v1094_v52 = vmul.f32 %v1086_v49, %v1086_v49 }
 0x156   :  { %v1101_v53 = vadd.f32 1e-05, %v1097_v50  ;;  %v1098_v55 = vsub.f32 %v1090_v51, %v1094_v52 }
 0x158   :  { %3477 = vrsqrt.f32 %v1101_v53  ;;  %v1102_v56 = vadd.f32 1e-05, %v1098_v55  ;;  %v3751_v55 = vsub.s32 3, %v3709_v57 }
 0x15a   :  { %3479 = vrsqrt.f32 %v1102_v56  ;;  %v1121_v56 = vrot.slane %v3714_v59, %v3748_v54 }
 0x165   :  { %v3478_v63 = vpop.eup %3477 }
 0x166   :  { %v3723_v0 = vmul.f32 %v3478_v63, %v1113_v61  ;;  %v3632_v61 = vmov 1966171168   ;;  %v1125_v63 = vrot.slane %v3714_v59, %v3751_v55 }
 0x167   :  { %v3480_v1 = vpop.eup %3479 }
 0x168   :  { %v3725_v2 = vmul.f32 %v3480_v1, %v1117_v62  ;;  %v3728_v3 = vmul.f32 %v3723_v0, %v1085_v43  ;;  %v1145_v62 = vunpack.c.l.s4 %v3632_v61  ;;  %v1171_v59 = vrot.slane %v3723_v0, %v3712_v58  ;;  %v3381_v61 = vld [vmem:[#allocation7 + $0x4c] ss:$16 sps:$4 sm:$0xff]  }
 0x16a   :  { %v3731_v4 = vmul.f32 %v3725_v2, %v1086_v49 }
 0x16c   :  { %v1142_v5 = vcombine.low %v3728_v3, %v3731_v4 }
 0x180   :  { %v985_v6 = vpop.f32.mrf.mxu0 }
 0x181   :  { %v1026_v7 = vpop.f32.mrf.mxu1 }
 0x182   :  { %v3735_v10 = vadd.f32 %v1026_v7, %v985_v6  ;;  %v987_v11 = vpop.f32.mrf.mxu0  ;;  %v1146_v7 = vunpack.c.0.s8 %v1145_v62  ;;  %v3384_v62 = vld [vmem:[#allocation7 + $0x24c] ss:$16 sps:$4 sm:$0xff]  }
 0x183   :  { %v1028_v12 = vpop.f32.mrf.mxu1 }
 0x184   :  { %v1045_v13 = vrot.slane %v3735_v10, 4  ;;  %v1059_v15 = vmul.f32 %v3735_v10, %v3735_v10  ;;  %v3740_v16 = vadd.f32 %v1028_v12, %v987_v11  ;;  %v989_v17 = vpop.f32.mrf.mxu0 }
 0x185   :  { %v1030_v18 = vpop.f32.mrf.mxu1  ;;  %v3758_v17 = vsub.s32 %v1146_v7, %v3709_v57  ;;  %v3390_v7 = vld [vmem:[#allocation7 + $0x22c] ss:$16 sps:$4 sm:$0xff]  }
 0x186   :  { %v1046_v19 = vadd.f32 %v1045_v13, %v3735_v10  ;;  %v1073_v9 = vrot.slane %v1059_v15, 4  ;;  %v1051_v20 = vrot.slane %v3740_v16, 4  ;;  %v1060_v21 = vmul.f32 %v3740_v16, %v3740_v16  ;;  %v990_v22 = vpop.f32.mrf.mxu0 }
 0x187   :  { %v1031_v23 = vpop.f32.mrf.mxu1  ;;  %v88_v22 = vld [vmem:[#allocation10 + $0x1] ss:$4 sm:$0xf] }
 0x188   :  { %v1047_v24 = vrot.slane %v1046_v19, 2  ;;  %v1074_v25 = vadd.f32 %v1073_v9, %v1059_v15  ;;  %v1052_v26 = vadd.f32 %v1051_v20, %v3740_v16  ;;  %v1079_v27 = vrot.slane %v1060_v21, 4 }
 0x189   :  { %v1150_v9 = vrot.slane %v1142_v5, %v3758_v17  ;;  %v1175_v23 = vrot.slane %v3725_v2, %v3712_v58 }
 0x18a   :  { %v1048_v28 = vadd.f32 %v1047_v24, %v1046_v19  ;;  %v1075_v29 = vrot.slane %v1074_v25, 2  ;;  %v1053_v30 = vrot.slane %v1052_v26, 2  ;;  %v1080_v31 = vadd.f32 %v1079_v27, %v1060_v21 }
 0x18b   :  { %v1185_v4 = vmul.f32 %v1175_v23, %v3702_v8  ;;  %v3408_v23 = vld [vmem:[#allocation7 + $0x3cc] ss:$16 sps:$4 sm:$0xff]  }
 0x18c   :  { %v1049_v32 = vrot.slane %v1048_v28, 1  ;;  %v1076_v33 = vadd.f32 %v1075_v29, %v1074_v25  ;;  %v1054_v34 = vadd.f32 %v1053_v30, %v1052_v26  ;;  %v1081_v35 = vrot.slane %v1080_v31, 2 }
 0x18d   :  { %v1184_v26 = vmul.f32 %v1171_v59, %v3697_v14  ;;  %v3397_v59 = vld [vmem:[#allocation7 + $0x1e8] ss:$16 sps:$4 sm:$0xff]  }
 0x18e   :  { %v1050_v36 = vadd.f32 %v1049_v32, %v1048_v28  ;;  %v1077_v37 = vrot.slane %v1076_v33, 1  ;;  %v1055_v38 = vrot.slane %v1054_v34, 1  ;;  %v1082_v39 = vadd.f32 %v1081_v35, %v1080_v31 }
 0x190   :  { %v1078_v40 = vadd.f32 %v1077_v37, %v1076_v33  ;;  %v1087_v41 = vmul.f32 0.125, %v1050_v36  ;;  %v1056_v42 = vadd.f32 %v1055_v38, %v1054_v34  ;;  %v1083_v43 = vrot.slane %v1082_v39, 1  ;;  %v3349_v36 = vld [vmem:[#allocation7 + $0xe8] ss:$16 sps:$4 sm:$0xff]  }
 0x192   :  { %v1091_v44 = vmul.f32 0.125, %v1078_v40  ;;  %v1095_v45 = vmul.f32 %v1087_v41, %v1087_v41  ;;  %v1084_v46 = vadd.f32 %v1083_v43, %v1082_v39  ;;  %v1088_v47 = vmul.f32 0.125, %v1056_v42  ;;  %v3357_v39 = vld [vmem:[#allocation7 + $0xcc] ss:$16 sps:$4 sm:$0xff]   ;;  %v3358_v42 = vld [vmem:[#allocation7 + $0x2c8] ss:$16 sps:$4 sm:$0xff]  }
 0x193   :  { %v3360_v40 = vld [vmem:[#allocation7 + $0x2cc] ss:$16 sps:$4 sm:$0xff]  }
 0x194   :  { %v1099_v48 = vsub.f32 %v1091_v44, %v1095_v45  ;;  %v1092_v49 = vmul.f32 0.125, %v1084_v46  ;;  %v1096_v50 = vmul.f32 %v1088_v47, %v1088_v47  ;;  %v3363_v43 = vld [vmem:[#allocation7 + $0xac] ss:$16 sps:$4 sm:$0xff]   ;;  %v3361_v45 = vld [vmem:[#allocation7 + $0xa8] ss:$16 sps:$4 sm:$0xff]  }
 0x195   :  { %v3366_v44 = vld [vmem:[#allocation7 + $0x2ac] ss:$16 sps:$4 sm:$0xff]   ;;  %v3364_v46 = vld [vmem:[#allocation7 + $0x2a8] ss:$16 sps:$4 sm:$0xff]  }
 0x196   :  { %v1103_v51 = vadd.f32 1e-05, %v1099_v48  ;;  %v1100_v52 = vsub.f32 %v1092_v49, %v1096_v50  ;;  %v3372_v48 = vld [vmem:[#allocation7 + $0x28c] ss:$16 sps:$4 sm:$0xff]   ;;  %v3367_v49 = vld [vmem:[#allocation7 + $0x88] ss:$16 sps:$4 sm:$0xff]  }
 0x197   :  { %v3370_v50 = vld [vmem:[#allocation7 + $0x288] ss:$16 sps:$4 sm:$0xff]  }
 0x198   :  { %3481 = vrsqrt.f32 %v1103_v51  ;;  %v1104_v53 = vadd.f32 1e-05, %v1100_v52  ;;  %v3375_v51 = vld [vmem:[#allocation7 + $0x6c] ss:$16 sps:$4 sm:$0xff]  }
 0x199   :  { %v3378_v52 = vld [vmem:[#allocation7 + $0x26c] ss:$16 sps:$4 sm:$0xff]  }
 0x19a   :  { %3483 = vrsqrt.f32 %v1104_v53  ;;  %v3373_v53 = vld [vmem:[#allocation7 + $0x68] ss:$16 sps:$4 sm:$0xff]  }
 0x1a5   :  { %v3482_v1 = vpop.eup %3481 }
 0x1a6   :  { %v1132_v6 = vmul.f32 %v3482_v1, %v1121_v56  ;;  %v3376_v56 = vld [vmem:[#allocation7 + $0x268] ss:$16 sps:$4 sm:$0xff]  }
 0x1a7   :  { %v3484_v11 = vpop.eup %3483  ;;  %v3382_v1 = vld [vmem:[#allocation7 + $0x248] ss:$16 sps:$4 sm:$0xff]  }
 0x1a8   :  { %v1133_v12 = vmul.f32 %v3484_v11, %v1125_v63  ;;  %v1136_v13 = vmul.f32 %v1132_v6, %v1087_v41  ;;  %v1179_v21 = vrot.slane %v1132_v6, %v3712_v58  ;;  %v3355_v41 = vld [vmem:[#allocation7 + $0xc8] ss:$16 sps:$4 sm:$0xff]   ;;  %v3387_v6 = vld [vmem:[#allocation7 + $0x2c] ss:$16 sps:$4 sm:$0xff]  }
 0x1a9   :  { %v3379_v63 = vld [vmem:[#allocation7 + $0x48] ss:$16 sps:$4 sm:$0xff]  }
 0x1aa   :  { %v1137_v15 = vmul.f32 %v1133_v12, %v1088_v47  ;;  %v1183_v57 = vrot.slane %v1133_v12, %v3712_v58  ;;  %v1186_v3 = vmul.f32 %v1179_v21, %v3735_v10  ;;  %v3369_v47 = vld [vmem:[#allocation7 + $0x8c] ss:$16 sps:$4 sm:$0xff]   ;;  %v3385_v11 = vld [vmem:[#allocation7 + $0x28] ss:$16 sps:$4 sm:$0xff]  }
 0x1ab   :  { %v3388_v12 = vld [vmem:[#allocation7 + $0x228] ss:$16 sps:$4 sm:$0xff]  }
 0x1ac   :  { %v1143_v18 = vcombine.low %v1136_v13, %v1137_v15  ;;  %v1187_v5 = vmul.f32 %v1183_v57, %v3740_v16  ;;  %v3352_v16 = vld [vmem:[#allocation7 + $0x2e8] ss:$16 sps:$4 sm:$0xff]   ;;  %v3393_v13 = vld [vmem:[#allocation7 + $0xc] ss:$16 sps:$4 sm:$0xff]  }
 0x1ad   :  { %v3396_v15 = vld [vmem:[#allocation7 + $0x20c] ss:$16 sps:$4 sm:$0xff]   ;;  %v3400_v21 = vld [vmem:[#allocation7 + $0x3e8] ss:$16 sps:$4 sm:$0xff]  }
 0x1ae   :  { %v1157_v19 = vrot.slane %v1143_v18, %v3758_v17  ;;  %v3391_v18 = vld [vmem:[#allocation7 + $0x8] ss:$16 sps:$4 sm:$0xff]  }
 0x1af   :  { %v3403_v57 = vld [vmem:[#allocation7 + $0x1c8] ss:$16 sps:$4 sm:$0xff]  }
 0x1b0   :  { %v1158_v20 = vcombine.low %v1150_v9, %v1157_v19  ;;  %v3394_v19 = vld [vmem:[#allocation7 + $0x208] ss:$16 sps:$4 sm:$0xff]   ;;  %v3399_v9 = vld [vmem:[#allocation7 + $0x1ec] ss:$16 sps:$4 sm:$0xff]  }
 0x1b2   :  { %v1165_v24 = vrot.slane %v1158_v20, %v3758_v17  ;;  %v3402_v20 = vld [vmem:[#allocation7 + $0x3ec] ss:$16 sps:$4 sm:$0xff]  }
 0x1b4   :  { %v1167_v25 = vsub.f32 %v88_v22, %v1165_v24  ;;  %v3405_v22 = vld [vmem:[#allocation7 + $0x1cc] ss:$16 sps:$4 sm:$0xff]   ;;  %v3406_v24 = vld [vmem:[#allocation7 + $0x3c8] ss:$16 sps:$4 sm:$0xff]  }
 0x1b6   :  { %v1196_v0 = vrot.slane %v1167_v25, %v3717_v60  ;;  %v1204_v27 = vrot.slane %v1167_v25, %v3751_v55  ;;  %v1192_v28 = vrot.slane %v1167_v25, %v3712_v58  ;;  %v1200_v2 = vrot.slane %v1167_v25, %v3748_v54  ;;  %v3411_v25 = vld [vmem:[#allocation7 + $0x1ac] ss:$16 sps:$4 sm:$0xff]  }
 0x1b8   :  { %v1210_v29 = vadd.f32 %v1196_v0, %v1185_v4  ;;  %v1212_v30 = vadd.f32 %v1204_v27, %v1187_v5  ;;  %v1209_v31 = vadd.f32 %v1192_v28, %v1184_v26  ;;  %v1211_v32 = vadd.f32 %v1200_v2, %v1186_v3  ;;  %v3414_v26 = vld [vmem:[#allocation7 + $0x3ac] ss:$16 sps:$4 sm:$0xff]   ;;  %v3409_v3 = vld [vmem:[#allocation7 + $0x1a8] ss:$16 sps:$4 sm:$0xff]  }
 0x1b9   :  { %v3412_v4 = vld [vmem:[#allocation7 + $0x3a8] ss:$16 sps:$4 sm:$0xff]   ;;  %v3417_v5 = vld [vmem:[#allocation7 + $0x18c] ss:$16 sps:$4 sm:$0xff]  }
 0x1ba   :  { %v1214_v33 = vmax.f32 %v1210_v29, 0.0  ;;  %v1216_v14 = vmax.f32 %v1212_v30, 0.0  ;;  %v1213_v34 = vmax.f32 %v1209_v31, 0.0  ;;  %v1215_v10 = vmax.f32 %v1211_v32, 0.0  ;;  %v3420_v0 = vld [vmem:[#allocation7 + $0x38c] ss:$16 sps:$4 sm:$0xff]  }
 0x1bb   :  { %v3415_v27 = vld [vmem:[#allocation7 + $0x188] ss:$16 sps:$4 sm:$0xff]   ;;  %v3423_v2 = vld [vmem:[#allocation7 + $0x16c] ss:$16 sps:$4 sm:$0xff]  }
 0x1bc   :  { %v1218_v35 = vpack.c.bf16 %v1214_v33, %v1214_v33  ;;  %v1220_v8 = vpack.c.bf16 %v1216_v14, %v1216_v14  ;;  %v3780_v37 = vpack.c.bf16 %v1213_v34, %v1213_v34  ;;  %v3782_v38 = vpack.c.bf16 %v1215_v10, %v1215_v10  ;;  %v3418_v28 = vld [vmem:[#allocation7 + $0x388] ss:$16 sps:$4 sm:$0xff]   ;;  %v3426_v29 = vld [vmem:[#allocation7 + $0x36c] ss:$16 sps:$4 sm:$0xff]  }
 0x1bd   :  { %v3421_v30 = vld [vmem:[#allocation7 + $0x168] ss:$16 sps:$4 sm:$0xff]   ;;  %v3429_v32 = vld [vmem:[#allocation7 + $0x14c] ss:$16 sps:$4 sm:$0xff]  }
 0x1be   :  { %2021 = vmatprep.mubr.bf16.mxu0 %v1218_v35  ;;  %2062 = vmatprep.mubr.bf16.mxu1 %v1220_v8  ;;  %v3424_v31 = vld [vmem:[#allocation7 + $0x368] ss:$16 sps:$4 sm:$0xff]   ;;  %v3432_v33 = vld [vmem:[#allocation7 + $0x34c] ss:$16 sps:$4 sm:$0xff]  }
 0x1bf   :  { %2022 = vmatmul.mubr.bf16.vlgmr.msra.gmra.mxu0 %v3780_v37  ;;  %2063 = vmatmul.mubr.bf16.vlgmr.msra.gmra.mxu1 %v3782_v38  ;;  %v3427_v14 = vld [vmem:[#allocation7 + $0x148] ss:$16 sps:$4 sm:$0xff]   ;;  %v3435_v10 = vld [vmem:[#allocation7 + $0x12c] ss:$16 sps:$4 sm:$0xff]  }
 0x1c0   :  { %2072 = vmatpush1.bf16.msra.mxu0 %v3349_v36  ;;  %2113 = vmatpush1.bf16.msra.mxu1 %v3352_v16  ;;  %v3430_v34 = vld [vmem:[#allocation7 + $0x348] ss:$16 sps:$4 sm:$0xff]   ;;  %v3441_v16 = vld [vmem:[#allocation7 + $0x10c] ss:$16 sps:$4 sm:$0xff]  }
 0x1c1   :  { %2103 = vmatprep.mubr.bf16.mxu0 %v1218_v35  ;;  %2144 = vmatprep.mubr.bf16.mxu1 %v1220_v8  ;;  %v3438_v35 = vld [vmem:[#allocation7 + $0x32c] ss:$16 sps:$4 sm:$0xff]   ;;  %v3433_v8 = vld [vmem:[#allocation7 + $0x128] ss:$16 sps:$4 sm:$0xff]  }
 0x1c2   :  { %2073 = vmatprep.subr.bf16.mxu0 %v3357_v39  ;;  %2114 = vmatprep.subr.bf16.mxu1 %v3360_v40  ;;  %v3436_v36 = vld [vmem:[#allocation7 + $0x328] ss:$16 sps:$4 sm:$0xff]   ;;  %v3444_v39 = vld [vmem:[#allocation7 + $0x30c] ss:$16 sps:$4 sm:$0xff]  }
 0x1c3   :  { %v3439_v40 = vld [vmem:[#allocation7 + $0x108] ss:$16 sps:$4 sm:$0xff]  }
 0x1c4   :  { %2074 = vmatpush1.bf16.msra.mxu0 %v3355_v41  ;;  %2115 = vmatpush1.bf16.msra.mxu1 %v3358_v42  ;;  %v3442_v41 = vld [vmem:[#allocation7 + $0x308] ss:$16 sps:$4 sm:$0xff]  }
 0x1c5   :  { %2075 = vmatprep.subr.bf16.mxu0 %v3363_v43  ;;  %2116 = vmatprep.subr.bf16.mxu1 %v3366_v44  ;;  %v3445_v42 = vld [vmem:[#allocation8 + $0x78] sm:$0xff]  }
 0x1c6   :  { %v3446_v43 = vld [vmem:[#allocation8 + $0xf8] sm:$0xff]  }
 0x1c7   :  { %v3447_v44 = vld [vmem:[#allocation8 + $0x38] sm:$0xff]  }
 0x1c8   :  { %2076 = vmatpush1.bf16.msra.mxu0 %v3361_v45  ;;  %2117 = vmatpush1.bf16.msra.mxu1 %v3364_v46  ;;  %v3448_v45 = vld [vmem:[#allocation8 + $0xb8] sm:$0xff]   ;;  %v3449_v46 = vld [vmem:[#allocation8 + $0x70] sm:$0xff]  }
 0x1c9   :  { %2077 = vmatprep.subr.bf16.mxu0 %v3369_v47  ;;  %2118 = vmatprep.subr.bf16.mxu1 %v3372_v48  ;;  %v3450_v47 = vld [vmem:[#allocation8 + $0xf0] sm:$0xff]  }
 0x1ca   :  { %v3451_v48 = vld [vmem:[#allocation8 + $0x30] sm:$0xff]  }
 0x1cc   :  { %2078 = vmatpush1.bf16.msra.mxu0 %v3367_v49  ;;  %2119 = vmatpush1.bf16.msra.mxu1 %v3370_v50  ;;  %v3452_v49 = vld [vmem:[#allocation8 + $0xb0] sm:$0xff]   ;;  %v3453_v50 = vld [vmem:[#allocation8 + $0x68] sm:$0xff]  }
 0x1cd   :  { %2079 = vmatprep.subr.bf16.mxu0 %v3375_v51  ;;  %2120 = vmatprep.subr.bf16.mxu1 %v3378_v52  ;;  %v3455_v51 = vld [vmem:[#allocation8 + $0x28] sm:$0xff]   ;;  %v3457_v52 = vld [vmem:[#allocation8 + $0x60] sm:$0xff]  }
 0x1d0   :  { %2080 = vmatpush1.bf16.msra.mxu0 %v3373_v53  ;;  %2121 = vmatpush1.bf16.msra.mxu1 %v3376_v56  ;;  %v3458_v53 = vld [vmem:[#allocation8 + $0xe0] sm:$0xff]  }
 0x1d1   :  { %2081 = vmatprep.subr.bf16.mxu0 %v3381_v61  ;;  %2122 = vmatprep.subr.bf16.mxu1 %v3384_v62  ;;  %v3459_v56 = vld [vmem:[#allocation8 + $0x20] sm:$0xff]   ;;  %v3461_v62 = vld [vmem:[#allocation8 + $0x58] sm:$0xff]  }
 0x1d2   :  { %v3460_v61 = vld [vmem:[#allocation8 + $0xa0] sm:$0xff]  }
 0x1d4   :  { %2082 = vmatpush1.bf16.msra.mxu0 %v3379_v63  ;;  %2123 = vmatpush1.bf16.msra.mxu1 %v3382_v1  ;;  %v3462_v63 = vld [vmem:[#allocation8 + $0xd8] sm:$0xff]  }
 0x1d5   :  { %2083 = vmatprep.subr.bf16.mxu0 %v3387_v6  ;;  %2124 = vmatprep.subr.bf16.mxu1 %v3390_v7  ;;  %v3463_v1 = vld [vmem:[#allocation8 + $0x18] sm:$0xff]   ;;  %v3465_v7 = vld [vmem:[#allocation8 + $0x50] sm:$0xff]  }
 0x1d6   :  { %v3464_v6 = vld [vmem:[#allocation8 + $0x98] sm:$0xff]  }
 0x1d8   :  { %2084 = vmatpush1.bf16.msra.mxu0 %v3385_v11  ;;  %2125 = vmatpush1.bf16.msra.mxu1 %v3388_v12  ;;  %v3466_v11 = vld [vmem:[#allocation8 + $0xd0] sm:$0xff]  }
 0x1d9   :  { %2085 = vmatprep.subr.bf16.mxu0 %v3393_v13  ;;  %2126 = vmatprep.subr.bf16.mxu1 %v3396_v15  ;;  %v3467_v12 = vld [vmem:[#allocation8 + $0x10] sm:$0xff]   ;;  %v3469_v15 = vld [vmem:[#allocation8 + $0x48] sm:$0xff]  }
 0x1da   :  { %v3468_v13 = vld [vmem:[#allocation8 + $0x90] sm:$0xff]  }
 0x1dc   :  { %2086 = vmatpush1.bf16.msra.mxu0 %v3391_v18  ;;  %2127 = vmatpush1.bf16.msra.mxu1 %v3394_v19  ;;  %v3470_v18 = vld [vmem:[#allocation8 + $0xc8] sm:$0xff]  }
 0x1dd   :  { %2087 = vmatprep.subr.bf16.mxu0 %v3399_v9  ;;  %2128 = vmatprep.subr.bf16.mxu1 %v3402_v20  ;;  %v3471_v19 = vld [vmem:[#allocation8 + $0x8] sm:$0xff]   ;;  %v3473_v20 = vld [vmem:[#allocation8 + $0x40] sm:$0xff]  }
 0x1de   :  { %v3472_v9 = vld [vmem:[#allocation8 + $0x88] sm:$0xff]  }
 0x1e0   :  { %2088 = vmatpush2.bf16.msra.mxu0 %v3397_v59  ;;  %2129 = vmatpush2.bf16.msra.mxu1 %v3400_v21  ;;  %v3474_v59 = vld [vmem:[#allocation8 + $0xc0] sm:$0xff]  }
 0x1e1   :  { %2089 = vmatprep.subr.bf16.mxu0 %v3405_v22  ;;  %2130 = vmatprep.subr.bf16.mxu1 %v3408_v23  ;;  %v3475_v21 = vld [vmem:[#allocation8] sm:$0xff]  }
 0x1e2   :  { %v3476_v22 = vld [vmem:[#allocation8 + $0x80] sm:$0xff]  }
 0x1e4   :  { %2090 = vmatpush2.bf16.msra.mxu0 %v3403_v57  ;;  %2131 = vmatpush2.bf16.msra.mxu1 %v3406_v24 }
 0x1e5   :  { %2091 = vmatprep.subr.bf16.mxu0 %v3411_v25  ;;  %2132 = vmatprep.subr.bf16.mxu1 %v3414_v26 }
 0x1e8   :  { %2092 = vmatpush2.bf16.msra.mxu0 %v3409_v3  ;;  %2133 = vmatpush2.bf16.msra.mxu1 %v3412_v4 }
 0x1e9   :  { %2093 = vmatprep.subr.bf16.mxu0 %v3417_v5  ;;  %2134 = vmatprep.subr.bf16.mxu1 %v3420_v0 }
 0x1ec   :  { %2094 = vmatpush2.bf16.msra.mxu0 %v3415_v27  ;;  %2135 = vmatpush2.bf16.msra.mxu1 %v3418_v28 }
 0x1ed   :  { %2095 = vmatprep.subr.bf16.mxu0 %v3423_v2  ;;  %2136 = vmatprep.subr.bf16.mxu1 %v3426_v29 }
 0x1f0   :  { %2096 = vmatpush2.bf16.msra.mxu0 %v3421_v30  ;;  %2137 = vmatpush2.bf16.msra.mxu1 %v3424_v31 }
 0x1f1   :  { %2097 = vmatprep.subr.bf16.mxu0 %v3429_v32  ;;  %2138 = vmatprep.subr.bf16.mxu1 %v3432_v33 }
 0x1f4   :  { %2098 = vmatpush2.bf16.msra.mxu0 %v3427_v14  ;;  %2139 = vmatpush2.bf16.msra.mxu1 %v3430_v34 }
 0x1f5   :  { %2099 = vmatprep.subr.bf16.mxu0 %v3435_v10  ;;  %2140 = vmatprep.subr.bf16.mxu1 %v3438_v35 }
 0x1f8   :  { %2100 = vmatpush2.bf16.msra.mxu0 %v3433_v8  ;;  %2141 = vmatpush2.bf16.msra.mxu1 %v3436_v36 }
 0x1f9   :  { %2101 = vmatprep.subr.bf16.mxu0 %v3441_v16  ;;  %2142 = vmatprep.subr.bf16.mxu1 %v3444_v39 }
 0x1fc   :  { %2102 = vmatpush2.bf16.msra.mxu0 %v3439_v40  ;;  %2143 = vmatpush2.bf16.msra.mxu1 %v3442_v41 }
 0x1fd   :  { %3006 = vmatprep.subr.bf16.mxu0 %v3445_v42  ;;  %3028 = vmatprep.subr.bf16.mxu1 %v3446_v43 }
 0x1ff   :  { %2104 = vmatmul.mubr.bf16.vlgmr.msra.gmra.mxu0 %v3780_v37  ;;  %2145 = vmatmul.mubr.bf16.vlgmr.msra.gmra.mxu1 %v3782_v38  ;;  %v3454_v37 = vld [vmem:[#allocation8 + $0xe8] sm:$0xff]  }
 0x200   :  { %3007 = vmatpush3.bf16.msra.mxu0 %v3447_v44  ;;  %3029 = vmatpush3.bf16.msra.mxu1 %v3448_v45  ;;  %v3456_v38 = vld [vmem:[#allocation8 + $0xa8] sm:$0xff]  }
 0x201   :  { %3008 = vmatprep.subr.bf16.mxu0 %v3449_v46  ;;  %3030 = vmatprep.subr.bf16.mxu1 %v3450_v47 }
 0x204   :  { %3009 = vmatpush3.bf16.msra.mxu0 %v3451_v48  ;;  %3031 = vmatpush3.bf16.msra.mxu1 %v3452_v49 }
 0x205   :  { %3010 = vmatprep.subr.bf16.mxu0 %v3453_v50  ;;  %3032 = vmatprep.subr.bf16.mxu1 %v3454_v37 }
 0x208   :  { %3011 = vmatpush3.bf16.msra.mxu0 %v3455_v51  ;;  %3033 = vmatpush3.bf16.msra.mxu1 %v3456_v38 }
 0x209   :  { %3012 = vmatprep.subr.bf16.mxu0 %v3457_v52  ;;  %3034 = vmatprep.subr.bf16.mxu1 %v3458_v53 }
 0x20c   :  { %3013 = vmatpush3.bf16.msra.mxu0 %v3459_v56  ;;  %3035 = vmatpush3.bf16.msra.mxu1 %v3460_v61 }
 0x20d   :  { %3014 = vmatprep.subr.bf16.mxu0 %v3461_v62  ;;  %3036 = vmatprep.subr.bf16.mxu1 %v3462_v63 }
 0x210   :  { %3015 = vmatpush3.bf16.msra.mxu0 %v3463_v1  ;;  %3037 = vmatpush3.bf16.msra.mxu1 %v3464_v6  ;;  %v3800_v6 = vld [vmem:[#allocation10 + $0x2] ss:$4 sm:$0xf] }
 0x211   :  { %3016 = vmatprep.subr.bf16.mxu0 %v3465_v7  ;;  %3038 = vmatprep.subr.bf16.mxu1 %v3466_v11  ;;  %v2233_v7 = vrot.slane %v3800_v6, %v3712_v58  ;;  %v2237_v11 = vrot.slane %v3800_v6, %v3717_v60 }
 0x214   :  { %3017 = vmatpush3.bf16.msra.mxu0 %v3467_v12  ;;  %3039 = vmatpush3.bf16.msra.mxu1 %v3468_v13 }
 0x215   :  { %3018 = vmatprep.subr.bf16.mxu0 %v3469_v15  ;;  %3040 = vmatprep.subr.bf16.mxu1 %v3470_v18 }
 0x218   :  { %3019 = vmatpush3.bf16.msra.mxu0 %v3471_v19  ;;  %3041 = vmatpush3.bf16.msra.mxu1 %v3472_v9 }
 0x219   :  { %3020 = vmatprep.subr.bf16.mxu0 %v3473_v20  ;;  %3042 = vmatprep.subr.bf16.mxu1 %v3474_v59 }
 0x21c   :  { %3021 = vmatpush3.bf16.msra.mxu0 %v3475_v21  ;;  %3043 = vmatpush3.bf16.msra.mxu1 %v3476_v22 }
 0x27f   :  { %v2023_v23 = vpop.f32.mrf.mxu0  ;;  %v2064_v57 = vpop.f32.mrf.mxu1 }
 0x280   :  { %v3788_v24 = vadd.f32 %v2064_v57, %v2023_v23 }
 0x281   :  { %v2025_v25 = vpop.f32.mrf.mxu0  ;;  %v2066_v26 = vpop.f32.mrf.mxu1 }
 0x282   :  { %v2153_v3 = vrot.slane %v3788_v24, 4  ;;  %v2177_v4 = vmul.f32 %v3788_v24, %v3788_v24  ;;  %v3793_v5 = vadd.f32 %v2066_v26, %v2025_v25 }
 0x283   :  { %v2027_v0 = vpop.f32.mrf.mxu0  ;;  %v2068_v27 = vpop.f32.mrf.mxu1 }
 0x284   :  { %v2154_v28 = vadd.f32 %v2153_v3, %v3788_v24  ;;  %v2181_v2 = vrot.slane %v2177_v4, 4  ;;  %v2159_v29 = vrot.slane %v3793_v5, 4  ;;  %v2178_v30 = vmul.f32 %v3793_v5, %v3793_v5 }
 0x285   :  { %v2028_v31 = vpop.f32.mrf.mxu0  ;;  %v2069_v32 = vpop.f32.mrf.mxu1 }
 0x286   :  { %v2155_v33 = vrot.slane %v2154_v28, 2  ;;  %v2182_v14 = vadd.f32 %v2181_v2, %v2177_v4  ;;  %v2160_v34 = vadd.f32 %v2159_v29, %v3793_v5  ;;  %v2187_v10 = vrot.slane %v2178_v30, 4 }
 0x288   :  { %v2156_v35 = vadd.f32 %v2155_v33, %v2154_v28  ;;  %v2183_v8 = vrot.slane %v2182_v14, 2  ;;  %v2161_v36 = vrot.slane %v2160_v34, 2  ;;  %v2188_v16 = vadd.f32 %v2187_v10, %v2178_v30 }
 0x28a   :  { %v2157_v39 = vrot.slane %v2156_v35, 1  ;;  %v2184_v40 = vadd.f32 %v2183_v8, %v2182_v14  ;;  %v2162_v41 = vadd.f32 %v2161_v36, %v2160_v34  ;;  %v2189_v42 = vrot.slane %v2188_v16, 2 }
 0x28c   :  { %v2158_v43 = vadd.f32 %v2157_v39, %v2156_v35  ;;  %v2185_v44 = vrot.slane %v2184_v40, 1  ;;  %v2163_v45 = vrot.slane %v2162_v41, 1  ;;  %v2190_v46 = vadd.f32 %v2189_v42, %v2188_v16 }
 0x28e   :  { %v2186_v47 = vadd.f32 %v2185_v44, %v2184_v40  ;;  %v2205_v48 = vmul.f32 0.125, %v2158_v43  ;;  %v2164_v49 = vadd.f32 %v2163_v45, %v2162_v41  ;;  %v2191_v50 = vrot.slane %v2190_v46, 1 }
 0x290   :  { %v2209_v37 = vmul.f32 0.125, %v2186_v47  ;;  %v2213_v51 = vmul.f32 %v2205_v48, %v2205_v48  ;;  %v2192_v38 = vadd.f32 %v2191_v50, %v2190_v46  ;;  %v2206_v52 = vmul.f32 0.125, %v2164_v49 }
 0x292   :  { %v2217_v53 = vsub.f32 %v2209_v37, %v2213_v51  ;;  %v2210_v56 = vmul.f32 0.125, %v2192_v38  ;;  %v2214_v61 = vmul.f32 %v2206_v52, %v2206_v52 }
 0x294   :  { %v2221_v62 = vadd.f32 1e-05, %v2217_v53  ;;  %v2218_v63 = vsub.f32 %v2210_v56, %v2214_v61 }
 0x296   :  { %3485 = vrsqrt.f32 %v2221_v62  ;;  %v2222_v1 = vadd.f32 1e-05, %v2218_v63 }
 0x298   :  { %3487 = vrsqrt.f32 %v2222_v1  ;;  %v2241_v1 = vrot.slane %v3800_v6, %v3748_v54 }
 0x2a3   :  { %v3486_v12 = vpop.eup %3485 }
 0x2a4   :  { %v3806_v13 = vmul.f32 %v3486_v12, %v2233_v7  ;;  %v2245_v7 = vrot.slane %v3800_v6, %v3751_v55 }
 0x2a5   :  { %v3488_v15 = vpop.eup %3487 }
 0x2a6   :  { %v3808_v18 = vmul.f32 %v3488_v15, %v2237_v11  ;;  %v2254_v19 = vmul.f32 %v3806_v13, %v2205_v48 }
 0x2a8   :  { %v2255_v9 = vmul.f32 %v3808_v18, %v2206_v52  ;;  %v2295_v6 = vrot.slane %v3808_v18, %v3712_v58 }
 0x2aa   :  { %v2262_v20 = vcombine.low %v2254_v19, %v2255_v9 }
 0x2bf   :  { %v2105_v59 = vpop.f32.mrf.mxu0  ;;  %v2146_v21 = vpop.f32.mrf.mxu1 }
 0x2c0   :  { %v3812_v22 = vadd.f32 %v2146_v21, %v2105_v59 }
 0x2c1   :  { %v2107_v23 = vpop.f32.mrf.mxu0  ;;  %v2148_v57 = vpop.f32.mrf.mxu1 }
 0x2c2   :  { %v2165_v25 = vrot.slane %v3812_v22, 4  ;;  %v2179_v26 = vmul.f32 %v3812_v22, %v3812_v22  ;;  %v3817_v3 = vadd.f32 %v2148_v57, %v2107_v23  ;;  %v2270_v57 = vrot.slane %v2262_v20, %v3758_v17 }
 0x2c3   :  { %v2109_v4 = vpop.f32.mrf.mxu0  ;;  %v2150_v0 = vpop.f32.mrf.mxu1  ;;  %v2305_v20 = vmul.f32 %v2295_v6, %v3793_v5 }
 0x2c4   :  { %v2166_v27 = vadd.f32 %v2165_v25, %v3812_v22  ;;  %v2193_v28 = vrot.slane %v2179_v26, 4  ;;  %v2171_v2 = vrot.slane %v3817_v3, 4  ;;  %v2180_v29 = vmul.f32 %v3817_v3, %v3817_v3  ;;  %v92_v0 = vld [vmem:[#allocation10 + $0x3] ss:$4 sm:$0xf] }
 0x2c5   :  { %v2110_v30 = vpop.f32.mrf.mxu0  ;;  %v2151_v31 = vpop.f32.mrf.mxu1 }
 0x2c6   :  { %v2167_v32 = vrot.slane %v2166_v27, 2  ;;  %v2194_v33 = vadd.f32 %v2193_v28, %v2179_v26  ;;  %v2172_v14 = vadd.f32 %v2171_v2, %v3817_v3  ;;  %v2199_v34 = vrot.slane %v2180_v29, 4 }
 0x2c7   :  { %v2291_v26 = vrot.slane %v3806_v13, %v3712_v58 }
 0x2c8   :  { %v2168_v10 = vadd.f32 %v2167_v32, %v2166_v27  ;;  %v2195_v35 = vrot.slane %v2194_v33, 2  ;;  %v2173_v8 = vrot.slane %v2172_v14, 2  ;;  %v2200_v36 = vadd.f32 %v2199_v34, %v2180_v29 }
 0x2c9   :  { %v2304_v29 = vmul.f32 %v2291_v26, %v3788_v24 }
 0x2ca   :  { %v2169_v16 = vrot.slane %v2168_v10, 1  ;;  %v2196_v39 = vadd.f32 %v2195_v35, %v2194_v33  ;;  %v2174_v40 = vadd.f32 %v2173_v8, %v2172_v14  ;;  %v2201_v41 = vrot.slane %v2200_v36, 2 }
 0x2cc   :  { %v2170_v42 = vadd.f32 %v2169_v16, %v2168_v10  ;;  %v2197_v43 = vrot.slane %v2196_v39, 1  ;;  %v2175_v44 = vrot.slane %v2174_v40, 1  ;;  %v2202_v45 = vadd.f32 %v2201_v41, %v2200_v36 }
 0x2ce   :  { %v2198_v46 = vadd.f32 %v2197_v43, %v2196_v39  ;;  %v2207_v47 = vmul.f32 0.125, %v2170_v42  ;;  %v2176_v48 = vadd.f32 %v2175_v44, %v2174_v40  ;;  %v2203_v49 = vrot.slane %v2202_v45, 1 }
 0x2d0   :  { %v2211_v50 = vmul.f32 0.125, %v2198_v46  ;;  %v2215_v37 = vmul.f32 %v2207_v47, %v2207_v47  ;;  %v2204_v51 = vadd.f32 %v2203_v49, %v2202_v45  ;;  %v2208_v38 = vmul.f32 0.125, %v2176_v48 }
 0x2d2   :  { %v2219_v52 = vsub.f32 %v2211_v50, %v2215_v37  ;;  %v2212_v53 = vmul.f32 0.125, %v2204_v51  ;;  %v2216_v56 = vmul.f32 %v2208_v38, %v2208_v38 }
 0x2d4   :  { %v2223_v61 = vadd.f32 1e-05, %v2219_v52  ;;  %v2220_v62 = vsub.f32 %v2212_v53, %v2216_v56 }
 0x2d6   :  { %3489 = vrsqrt.f32 %v2223_v61  ;;  %v2224_v63 = vadd.f32 1e-05, %v2220_v62 }
 0x2d8   :  { %3491 = vrsqrt.f32 %v2224_v63 }
 0x2e3   :  { %v3490_v11 = vpop.eup %3489 }
 0x2e4   :  { %v2252_v12 = vmul.f32 %v3490_v11, %v2241_v1 }
 0x2e5   :  { %v3492_v15 = vpop.eup %3491 }
 0x2e6   :  { %v2253_v19 = vmul.f32 %v3492_v15, %v2245_v7  ;;  %v2256_v9 = vmul.f32 %v2252_v12, %v2207_v47  ;;  %v2299_v4 = vrot.slane %v2252_v12, %v3712_v58 }
 0x2e8   :  { %v2257_v59 = vmul.f32 %v2253_v19, %v2208_v38  ;;  %v2303_v27 = vrot.slane %v2253_v19, %v3712_v58  ;;  %v2306_v30 = vmul.f32 %v2299_v4, %v3812_v22 }
 0x2ea   :  { %v2263_v21 = vcombine.low %v2256_v9, %v2257_v59  ;;  %v2307_v31 = vmul.f32 %v2303_v27, %v3817_v3 }
 0x2ec   :  { %v2277_v23 = vrot.slane %v2263_v21, %v3758_v17 }
 0x2ee   :  { %v2278_v25 = vcombine.low %v2270_v57, %v2277_v23 }
 0x2f0   :  { %v2285_v28 = vrot.slane %v2278_v25, %v3758_v17 }
 0x2f2   :  { %v2287_v2 = vsub.f32 %v92_v0, %v2285_v28 }
 0x2f4   :  { %v2316_v13 = vrot.slane %v2287_v2, %v3717_v60  ;;  %v2324_v32 = vrot.slane %v2287_v2, %v3751_v55  ;;  %v2312_v33 = vrot.slane %v2287_v2, %v3712_v58  ;;  %v2320_v18 = vrot.slane %v2287_v2, %v3748_v54 }
 0x2f6   :  { %v2330_v14 = vadd.f32 %v2316_v13, %v2305_v20  ;;  %v2332_v34 = vadd.f32 %v2324_v32, %v2307_v31  ;;  %v2329_v17 = vadd.f32 %v2312_v33, %v2304_v29  ;;  %v2331_v10 = vadd.f32 %v2320_v18, %v2306_v30 }
 0x2f8   :  { %v2334_v35 = vmax.f32 %v2330_v14, 0.0  ;;  %v2336_v24 = vmax.f32 %v2332_v34, 0.0  ;;  %v2333_v8 = vmax.f32 %v2329_v17, 0.0  ;;  %v2335_v22 = vmax.f32 %v2331_v10, 0.0 }
 0x2fa   :  { %v2338_v36 = vpack.c.bf16 %v2334_v35, %v2334_v35  ;;  %v2340_v5 = vpack.c.bf16 %v2336_v24, %v2336_v24  ;;  %v2337_v16 = vpack.c.bf16 %v2333_v8, %v2333_v8  ;;  %v2339_v3 = vpack.c.bf16 %v2335_v22, %v2335_v22 }
 0x2fc   :  { %2629 = vmatprep.mubr.bf16.mxu0 %v2338_v36  ;;  %2669 = vmatprep.mubr.bf16.mxu1 %v2340_v5 }
 0x2fd   :  { %2630 = vmatmul.mubr.bf16.vlgmr.msra.gmra.mxu0 %v2337_v16  ;;  %2670 = vmatmul.mubr.bf16.vlgmr.msra.gmra.mxu1 %v2339_v3 }
 0x3bd   :  { %v3022_v60 = vpop.f32.mrf.mxu0  ;;  %v3044_v58 = vpop.f32.mrf.mxu1 }
 0x3bf   :  { %v3023_v55 = vpop.f32.mrf.mxu0  ;;  %v3045_v54 = vpop.f32.mrf.mxu1 }
 0x3c0   :  { %v3024_v39 = vadd.f32 %v3023_v55, %v3022_v60  ;;  %v3046_v40 = vadd.f32 %v3045_v54, %v3044_v58 }
 0x3c1   :  { %v3025_v41 = vpop.f32.mrf.mxu0  ;;  %v3047_v42 = vpop.f32.mrf.mxu1 }
 0x3c2   :  { %v2672_v43 = vadd.f32 %v3046_v40, %v3024_v39 }
 0x3c3   :  { %v3026_v44 = vpop.f32.mrf.mxu0  ;;  %v3048_v45 = vpop.f32.mrf.mxu1 }
 0x3c4   :  { %v2677_v46 = vrot.slane %v2672_v43, 4  ;;  %v2683_v47 = vmul.f32 %v2672_v43, %v2672_v43 }
 0x3c6   :  { %v2678_v48 = vadd.f32 %v2677_v46, %v2672_v43  ;;  %v2684_v49 = vrot.slane %v2683_v47, 4 }
 0x3c8   :  { %v2679_v50 = vrot.slane %v2678_v48, 2  ;;  %v2685_v37 = vadd.f32 %v2684_v49, %v2683_v47 }
 0x3ca   :  { %v2686_v51 = vrot.slane %v2685_v37, 2  ;;  %v2680_v38 = vadd.f32 %v2679_v50, %v2678_v48 }
 0x3cc   :  { %v2687_v52 = vadd.f32 %v2686_v51, %v2685_v37  ;;  %v2681_v53 = vrot.slane %v2680_v38, 1 }
 0x3ce   :  { %v2688_v56 = vrot.slane %v2687_v52, 1  ;;  %v2682_v61 = vadd.f32 %v2681_v53, %v2680_v38 }
 0x3d0   :  { %v2689_v62 = vadd.f32 %v2688_v56, %v2687_v52  ;;  %v2690_v63 = vmul.f32 0.125, %v2682_v61 }
 0x3d2   :  { %v2691_v1 = vmul.f32 0.125, %v2689_v62  ;;  %v2692_v7 = vmul.f32 %v2690_v63, %v2690_v63  ;;  %v2696_v15 = vsub.f32 0.0, %v2690_v63 }
 0x3d4   :  { %v2693_v11 = vsub.f32 %v2691_v1, %v2692_v7 }
 0x3d6   :  { %v2694_v12 = vadd.f32 1e-05, %v2693_v11 }
 0x3d8   :  { %3493 = vrsqrt.f32 %v2694_v12 }
 0x3e5   :  { %v3494_v19 = vpop.eup %3493 }
 0x3e6   :  { %v2697_v9 = vmul.f32 %v3494_v19, %v2696_v15  ;;  %v2698_v59 = vmul.f32 %v3494_v19, %v2672_v43 }
 0x3e8   :  { %v2699_v21 = vadd.f32 %v2698_v59, %v2697_v9 }
 0x3ea   :  { %2700 = vst [vmem:[#allocation11] sm:$0xff] %v2699_v21 }
 0x3eb   :  { %3606 = shalt.err (!%p3603_p1)
}
 0x3ec   :  { %2710 = dma.vmem_to_hbm [thread:$0]  %s2708_s4, 128, %s3853_s5, [#allocation4]  }
 0x3ed   :  { %3621 = dma.done.wait [#allocation4], 128  }
 0x3ee   :  { %3622 = vsyncadd [#allocation4], 4294967168 }
 0x3ef   :  { %2714 = vsyncpa [#allocation3], 1 }
 0x3f0   :  { %2715 = vsyncpa [#allocation6], 1 }
 0x3f1   :  { %2716 = vsyncpa [#allocation9], 1 }
 0x3f2   :  { %2717 = vsyncpa [#allocation4], 1 }

</bundles_post_ra>
